<compile_context>
chip_gen: v7x
topology: tpu7x:2x2x1
jax: 0.10.0
libtpu: 0.0.40
codegen_flags: <defaults>
</compile_context>

<pallas_src>
import functools

import jax
import jax.numpy as jnp
import numpy as np
from jax.experimental import pallas as pl
from jax.experimental.pallas import tpu as pltpu

BN_EPS = 1e-5
LANES = 128   # Cout padding granularity; multiples of 256 (v6e/v7x full MXU width)
              # fall out automatically for production channel counts.


def _round_up(x, m):
    return (x + m - 1) // m * m


def _cdiv(a, b):
    return (a + b - 1) // b


# ---------------------------------------------------------------------------
# Sweep 1: direct 3x3 dilated conv (9 shifted MXU matmuls, bf16 -> f32) over a
# flat W_pad-strided slab, + masked per-channel sum / sum-of-squares for BN.
# Writes the conv result y (bf16) so sweep 2 never re-does the matmuls.
# ---------------------------------------------------------------------------
def _conv_stats_kernel(x_ref, w_ref, mask_ref, y_ref, sum_ref, sumsq_ref, *,
                       dil, w_pad, tp_out):
    # x_ref:    (1, TP_IN, Cin)   bf16   flat padded input rows (with halo)
    # w_ref:    (9, Cin, Coutp)   bf16   per-tap weights
    # mask_ref: (1, TP_OUT, 1)    f32    1.0 on real (h, w) pixels, 0.0 on padding
    coutp = w_ref.shape[2]
    acc = jnp.zeros((tp_out, coutp), jnp.float32)
    for ki in range(3):
        for kj in range(3):
            off = ki * dil * w_pad + kj * dil           # static flat-row offset of tap
            lhs = x_ref[0, off:off + tp_out, :]          # (TP_OUT, Cin) bf16
            acc = acc + jnp.dot(lhs, w_ref[ki * 3 + kj],
                                preferred_element_type=jnp.float32)
    y_ref[0] = acc.astype(y_ref.dtype)                   # conv output, reused by sweep 2

    # Masked BN statistics (f32).  Single-pass E[y^2]-E[y]^2 is kept intentionally; the
    # wrapper clamps the variance at 0 and folds it in f32.
    vm = mask_ref[0]                                      # (TP_OUT, 1)
    ym = acc * vm
    sum_ref[0] = jnp.sum(ym, axis=0, keepdims=True)       # (1, Coutp)
    sumsq_ref[0] = jnp.sum(ym * acc, axis=0, keepdims=True)


# ---------------------------------------------------------------------------
# Sweep 2: pure elementwise folded BN (one FMA) + ReLU over the stored conv y.
# ---------------------------------------------------------------------------
def _bn_relu_kernel(y_ref, scale_ref, shift_ref, o_ref):
    y = y_ref[0].astype(jnp.float32)                              # (TP_OUT, Coutp)
    o_ref[0] = jnp.maximum(y * scale_ref[...] + shift_ref[...], 0.0).astype(o_ref.dtype)


@functools.partial(jax.jit, static_argnames=("dilation", "slab_rows"))
def conv_block_pallas(x, weight, bias, gamma, beta, dilation=1, slab_rows=None):
    """x: (N, Cin, H, W) NCHW.  weight: (Cout, Cin, 3, 3) OIHW.  Returns NCHW f32."""
    N, Cin, H, W = x.shape
    Cout = weight.shape[0]
    d = dilation
    # A per-channel bias added before train-mode BatchNorm is exactly cancelled by the
    # mean subtraction -> drop it (the f32 reference keeps it and still matches).
    del bias

    Coutp = _round_up(Cout, LANES)
    W_pad = W + 2 * d                      # padded row width; also the flat row stride
    HALO = 2 * d * W_pad + 2 * d           # extra flat rows needed by the largest tap

    # ---- generation-aware slab (tile) sizing ---------------------------------------
    try:
        vmem_cap = int(pltpu.get_tpu_info().vmem_capacity_bytes)
    except Exception:                       # pragma: no cover - conservative fallback
        vmem_cap = 128 * 1024 * 1024
    # ~24 MiB working set on v5e/v6e (128 MiB VMEM), ~12 MiB on v7x (64 MiB VMEM).
    budget = max(6 << 20, min(24 << 20, (vmem_cap * 3) // 16))

    if slab_rows is not None:
        TH = max(1, min(int(slab_rows), H))
        num_slabs = _cdiv(H, TH)
    else:
        # per-step VMEM (bytes):  2x in slab (bf16) + 2x weights (bf16) + 2x y out (bf16)
        #                        + f32 accumulator/value temps
        fixed = 4 * HALO * Cin + 36 * Cin * Coutp
        per_row = W_pad * (4 * Cin + 12 * Coutp)
        TH = max(1, min(H, (budget - fixed) // per_row))
        num_slabs = _cdiv(H, TH)
        # v7x has two TensorCores: make sure the parallel grid has >= 2 tiles, nudge even.
        if N * num_slabs < 2 and H >= 2:
            num_slabs = 2
        elif (N * num_slabs) % 2 == 1 and num_slabs < H:
            num_slabs += 1
        TH = _cdiv(H, num_slabs)
        num_slabs = _cdiv(H, TH)

    TP_OUT = TH * W_pad                    # flat output rows per tile
    TP_IN = TP_OUT + HALO                  # flat input rows per tile (with halo)
    H_pad = num_slabs * TH + 2 * d + 1     # +1 row covers the +2d flat-position overrun
    num_tiles = N * num_slabs

    # ---- one cheap wrapper pass: NCHW -> padded NHWC -> bf16 overlapped slabs -------
    x_nhwc = x.transpose(0, 2, 3, 1)                                   # (N, H, W, Cin)
    xp = jnp.pad(x_nhwc, ((0, 0), (d, H_pad - H - d), (d, d), (0, 0)))
    xf = xp.reshape(N, H_pad * W_pad, Cin).astype(jnp.bfloat16)
    x_slabs = jnp.stack(
        [xf[:, s * TP_OUT:s * TP_OUT + TP_IN, :] for s in range(num_slabs)],
        axis=1,
    ).reshape(num_tiles, TP_IN, Cin)

    # per-tap weights (9, Cin, Coutp), bf16, lane-dense output channels
    w_taps = weight.transpose(2, 3, 1, 0).reshape(9, Cin, Cout)
    w_taps = jnp.pad(w_taps, ((0, 0), (0, 0), (0, Coutp - Cout))).astype(jnp.bfloat16)

    # 0/1 validity mask per slab (compile-time constant): excludes the W_pad columns and
    # the bottom padding rows from the BN statistics.
    col = np.arange(TP_OUT) % W_pad
    row = np.arange(TP_OUT) // W_pad
    mask_np = np.zeros((num_slabs, TP_OUT, 1), np.float32)
    for s in range(num_slabs):
        mask_np[s, :, 0] = ((col < W) & (s * TH + row < H)).astype(np.float32)
    mask = jnp.asarray(mask_np)

    cparams = pltpu.CompilerParams(
        dimension_semantics=("parallel",),                 # shard tiles across TCs (v7x)
        vmem_limit_bytes=int(min(vmem_cap // 2, 64 << 20)),
    )

    # ---- sweep 1: conv (stored once, bf16) + masked per-tile channel sums -----------
    kern1 = functools.partial(_conv_stats_kernel, dil=d, w_pad=W_pad, tp_out=TP_OUT)
    conv_y, sums, sumsqs = pl.pallas_call(
        kern1,
        grid=(num_tiles,),
        in_specs=[
            pl.BlockSpec((1, TP_IN, Cin), lambda i: (i, 0, 0)),
            # TODO(synk): pipeline_mode=pl.Buffered(1) (constant block index) once verified.
            pl.BlockSpec((9, Cin, Coutp), lambda i: (0, 0, 0)),
            pl.BlockSpec((1, TP_OUT, 1), lambda i: (i % num_slabs, 0, 0)),
        ],
        out_specs=(
            pl.BlockSpec((1, TP_OUT, Coutp), lambda i: (i, 0, 0)),
            pl.BlockSpec((1, 1, Coutp), lambda i: (i, 0, 0)),
            pl.BlockSpec((1, 1, Coutp), lambda i: (i, 0, 0)),
        ),
        out_shape=(
            jax.ShapeDtypeStruct((num_tiles, TP_OUT, Coutp), jnp.bfloat16),
            jax.ShapeDtypeStruct((num_tiles, 1, Coutp), jnp.float32),
            jax.ShapeDtypeStruct((num_tiles, 1, Coutp), jnp.float32),
        ),
        compiler_params=cparams,
        cost_estimate=pl.CostEstimate(
            flops=2 * 9 * num_tiles * TP_OUT * Cin * Coutp,
            transcendentals=0,
            bytes_accessed=(x_slabs.size * 2 + w_taps.size * 2
                            + num_tiles * TP_OUT * Coutp * 2
                            + 2 * num_tiles * Coutp * 4),
        ),
    )(x_slabs, w_taps, mask)

    # ---- tiny cross-tile reduction + fold gamma/beta/mean/rsqrt into scale & shift --
    count = jnp.float32(N * H * W)
    mean = jnp.sum(sums, axis=(0, 1)) / count              # (Coutp,) f32
    ex2 = jnp.sum(sumsqs, axis=(0, 1)) / count
    var = jnp.maximum(ex2 - mean * mean, 0.0)               # biased variance (train mode)
    gamma_p = jnp.pad(gamma.astype(jnp.float32), (0, Coutp - Cout))
    beta_p = jnp.pad(beta.astype(jnp.float32), (0, Coutp - Cout))
    scale = gamma_p * jax.lax.rsqrt(var + BN_EPS)
    shift = beta_p - mean * scale

    # ---- sweep 2: elementwise y*scale + shift + ReLU (no conv recompute) ------------
    out_flat = pl.pallas_call(
        _bn_relu_kernel,
        grid=(num_tiles,),
        in_specs=[
            pl.BlockSpec((1, TP_OUT, Coutp), lambda i: (i, 0, 0)),
            pl.BlockSpec((1, Coutp), lambda i: (0, 0)),
            pl.BlockSpec((1, Coutp), lambda i: (0, 0)),
        ],
        out_specs=pl.BlockSpec((1, TP_OUT, Coutp), lambda i: (i, 0, 0)),
        out_shape=jax.ShapeDtypeStruct((num_tiles, TP_OUT, Coutp), x.dtype),
        compiler_params=cparams,
        cost_estimate=pl.CostEstimate(
            flops=2 * num_tiles * TP_OUT * Coutp,
            transcendentals=0,
            bytes_accessed=num_tiles * TP_OUT * Coutp * (2 + x.dtype.itemsize),
        ),
    )(conv_y, scale.reshape(1, Coutp), shift.reshape(1, Coutp))

    # strip padding, back to NCHW (module contract)
    out = out_flat.reshape(N, num_slabs * TH, W_pad, Coutp)[:, :H, :W, :Cout]
    return out.transpose(0, 3, 1, 2)


# ---------------------------------------------------------------------------
# References
# ---------------------------------------------------------------------------
def conv_block_matched_ref(x, weight, gamma, beta, dilation=1):
    """Plain-JAX replica of the kernel's exact math (per-tap bf16 MXU matmuls with f32
    accumulation, f32 global stats, bf16-rounded y before scale/shift/ReLU)."""
    N, C, H, W = x.shape
    Cout = weight.shape[0]
    d = dilation
    xp = jnp.pad(x.transpose(0, 2, 3, 1),
                 ((0, 0), (d, d), (d, d), (0, 0))).astype(jnp.bfloat16)
    wt = weight.transpose(2, 3, 1, 0).astype(jnp.bfloat16)          # (3, 3, Cin, Cout)
    y = jnp.zeros((N, H, W, Cout), jnp.float32)
    for ki in range(3):
        for kj in range(3):
            lhs = xp[:, ki * d:ki * d + H, kj * d:kj * d + W, :]
            y = y + jnp.einsum("nhwc,co->nhwo", lhs, wt[ki, kj],
                               preferred_element_type=jnp.float32)
    yf = y.reshape(-1, Cout)
    mean = jnp.mean(yf, axis=0)
    var = jnp.maximum(jnp.mean(yf * yf, axis=0) - mean * mean, 0.0)
    scale = gamma * jax.lax.rsqrt(var + BN_EPS)
    shift = beta - mean * scale
    yq = y.astype(jnp.bfloat16).astype(jnp.float32)                 # stored-y rounding
    out = jnp.maximum(yq * scale + shift, 0.0)
    return out.transpose(0, 3, 1, 2).astype(x.dtype)


def conv_block_reference(x, weight, bias, gamma, beta, dilation=1):
    """Full-f32 PyTorch forward semantics (Conv2d + train-mode BatchNorm2d + ReLU)."""
    y = jax.lax.conv_general_dilated(
        x, weight,
        window_strides=(1, 1),
        padding=[(dilation, dilation), (dilation, dilation)],
        rhs_dilation=(dilation, dilation),
        dimension_numbers=("NCHW", "OIHW", "NCHW"),
        precision=jax.lax.Precision.HIGHEST,
    )
    y = y + bias[None, :, None, None]
    mean = y.mean(axis=(0, 2, 3), keepdims=True)
    var = jnp.square(y - mean).mean(axis=(0, 2, 3), keepdims=True)
    y_hat = (y - mean) * jax.lax.rsqrt(var + BN_EPS)
    return jnp.maximum(gamma[None, :, None, None] * y_hat
                       + beta[None, :, None, None], 0.0)


if __name__ == "__main__":
    key = jax.random.PRNGKey(0)
    k_x, k_w, k_b = jax.random.split(key, 3)

    N, Cin, H, W = 2, 4, 16, 16
    Cout = 8
    dilation = 2

    x = jax.random.normal(k_x, (N, Cin, H, W), dtype=jnp.float32)
    weight = 0.1 * jax.random.normal(k_w, (Cout, Cin, 3, 3), dtype=jnp.float32)
    bias = 0.05 * jax.random.normal(k_b, (Cout,), dtype=jnp.float32)
    gamma = 1.0 + 0.1 * jnp.arange(Cout, dtype=jnp.float32)
    beta = 0.02 * jnp.arange(Cout, dtype=jnp.float32) - 0.05

    ref_match = conv_block_matched_ref(x, weight, gamma, beta, dilation=dilation)
    ref_mod = conv_block_reference(x, weight, bias, gamma, beta, dilation=dilation)

    # (1) forced small slabs: exercises multi-slab halos, partial bottom-row masking and
    #     the cross-tile BN reduction (8 grid tiles).
    # (2) auto sizing: exercises the generation-aware VMEM-budget path (2 grid tiles).
    for slab_rows in (5, None):
        out = conv_block_pallas(x, weight, bias, gamma, beta,
                                dilation=dilation, slab_rows=slab_rows)
        out = jax.block_until_ready(out)
        assert out.shape == (N, Cout, H, W), out.shape

        # Tight check against an exact replica of the kernel math.
        err_match = float(jnp.max(jnp.abs(out - ref_match)))
        assert err_match < 5e-3, (slab_rows, err_match)

        # Semantic check against the full-f32 module reference (bias included there; it
        # is cancelled by BN).  Tolerance covers bf16 MXU operands / bf16 y storage.
        err_mod = float(jnp.max(jnp.abs(out - ref_mod)))
        assert err_mod < 5e-2, (slab_rows, err_mod)

    print("KERNEL_OK")
</pallas_src>

<mosaic_0001>
module attributes {stable_mosaic.version = 11 : i64} {
  func.func @_conv_stats_kernel(%arg0: i32, %arg1: memref<1x184x4xbf16, #tpu.memory_space<vmem>>, %arg2: memref<9x4x128xbf16, #tpu.memory_space<vmem>>, %arg3: memref<1x100x1xf32, #tpu.memory_space<vmem>>, %arg4: memref<1x100x128xbf16, #tpu.memory_space<vmem>>, %arg5: memref<1x1x128xf32, #tpu.memory_space<vmem>>, %arg6: memref<1x1x128xf32, #tpu.memory_space<vmem>>) attributes {dimension_semantics = [#tpu.dimension_semantics<parallel>], iteration_bounds = array<i64: 8>, scalar_prefetch = 0 : i64, scratch_operands = 0 : i64, tpu.core_type = #tpu.core_type<tc>, window_params = [{transform_indices = @transform_0, window_bounds = array<i64: 1, 184, 4>}, {pipeline_mode = #tpu.pipeline_mode<synchronous>, transform_indices = @transform_1, window_bounds = array<i64: 9, 4, 128>}, {transform_indices = @transform_2, window_bounds = array<i64: 1, 100, 1>}, {transform_indices = @transform_3, window_bounds = array<i64: 1, 100, 128>}, {transform_indices = @transform_4, window_bounds = array<i64: 1, 1, 128>}, {transform_indices = @transform_5, window_bounds = array<i64: 1, 1, 128>}]} {
    %cst = arith.constant 0.000000e+00 : f32
    %0 = vector.broadcast %cst : f32 to vector<100x128xf32>
    %c0 = arith.constant 0 : index
    %c0_0 = arith.constant 0 : index
    %c0_1 = arith.constant 0 : index
    %1 = vector.load %arg1[%c0, %c0_0, %c0_1] : memref<1x184x4xbf16, #tpu.memory_space<vmem>>, vector<1x100x4xbf16>
    %2 = vector.shape_cast %1 : vector<1x100x4xbf16> to vector<100x4xbf16>
    %c0_2 = arith.constant 0 : index
    %c0_3 = arith.constant 0 : index
    %c0_4 = arith.constant 0 : index
    %3 = vector.load %arg2[%c0_2, %c0_3, %c0_4] : memref<9x4x128xbf16, #tpu.memory_space<vmem>>, vector<1x4x128xbf16>
    %4 = vector.shape_cast %3 : vector<1x4x128xbf16> to vector<4x128xbf16>
    %cst_5 = arith.constant dense<0.000000e+00> : vector<100x128xf32>
    %5 = tpu.matmul %2, %4, %cst_5 {dimension_numbers = #tpu.dot_dimension_numbers<[1], [0], [0], [1], [0, 0, 1, 1], [], []>} : vector<100x4xbf16>, vector<4x128xbf16>, vector<100x128xf32> -> vector<100x128xf32>
    %6 = arith.addf %0, %5 : vector<100x128xf32>
    %c0_6 = arith.constant 0 : index
    %c2 = arith.constant 2 : index
    %c0_7 = arith.constant 0 : index
    %7 = vector.load %arg1[%c0_6, %c2, %c0_7] : memref<1x184x4xbf16, #tpu.memory_space<vmem>>, vector<1x100x4xbf16>
    %8 = vector.shape_cast %7 : vector<1x100x4xbf16> to vector<100x4xbf16>
    %c1 = arith.constant 1 : index
    %c0_8 = arith.constant 0 : index
    %c0_9 = arith.constant 0 : index
    %9 = vector.load %arg2[%c1, %c0_8, %c0_9] : memref<9x4x128xbf16, #tpu.memory_space<vmem>>, vector<1x4x128xbf16>
    %10 = vector.shape_cast %9 : vector<1x4x128xbf16> to vector<4x128xbf16>
    %cst_10 = arith.constant dense<0.000000e+00> : vector<100x128xf32>
    %11 = tpu.matmul %8, %10, %cst_10 {dimension_numbers = #tpu.dot_dimension_numbers<[1], [0], [0], [1], [0, 0, 1, 1], [], []>} : vector<100x4xbf16>, vector<4x128xbf16>, vector<100x128xf32> -> vector<100x128xf32>
    %12 = arith.addf %6, %11 : vector<100x128xf32>
    %c0_11 = arith.constant 0 : index
    %c4 = arith.constant 4 : index
    %c0_12 = arith.constant 0 : index
    %13 = vector.load %arg1[%c0_11, %c4, %c0_12] : memref<1x184x4xbf16, #tpu.memory_space<vmem>>, vector<1x100x4xbf16>
    %14 = vector.shape_cast %13 : vector<1x100x4xbf16> to vector<100x4xbf16>
    %c2_13 = arith.constant 2 : index
    %c0_14 = arith.constant 0 : index
    %c0_15 = arith.constant 0 : index
    %15 = vector.load %arg2[%c2_13, %c0_14, %c0_15] : memref<9x4x128xbf16, #tpu.memory_space<vmem>>, vector<1x4x128xbf16>
    %16 = vector.shape_cast %15 : vector<1x4x128xbf16> to vector<4x128xbf16>
    %cst_16 = arith.constant dense<0.000000e+00> : vector<100x128xf32>
    %17 = tpu.matmul %14, %16, %cst_16 {dimension_numbers = #tpu.dot_dimension_numbers<[1], [0], [0], [1], [0, 0, 1, 1], [], []>} : vector<100x4xbf16>, vector<4x128xbf16>, vector<100x128xf32> -> vector<100x128xf32>
    %18 = arith.addf %12, %17 : vector<100x128xf32>
    %c0_17 = arith.constant 0 : index
    %c40 = arith.constant 40 : index
    %c0_18 = arith.constant 0 : index
    %19 = vector.load %arg1[%c0_17, %c40, %c0_18] : memref<1x184x4xbf16, #tpu.memory_space<vmem>>, vector<1x100x4xbf16>
    %20 = vector.shape_cast %19 : vector<1x100x4xbf16> to vector<100x4xbf16>
    %c3 = arith.constant 3 : index
    %c0_19 = arith.constant 0 : index
    %c0_20 = arith.constant 0 : index
    %21 = vector.load %arg2[%c3, %c0_19, %c0_20] : memref<9x4x128xbf16, #tpu.memory_space<vmem>>, vector<1x4x128xbf16>
    %22 = vector.shape_cast %21 : vector<1x4x128xbf16> to vector<4x128xbf16>
    %cst_21 = arith.constant dense<0.000000e+00> : vector<100x128xf32>
    %23 = tpu.matmul %20, %22, %cst_21 {dimension_numbers = #tpu.dot_dimension_numbers<[1], [0], [0], [1], [0, 0, 1, 1], [], []>} : vector<100x4xbf16>, vector<4x128xbf16>, vector<100x128xf32> -> vector<100x128xf32>
    %24 = arith.addf %18, %23 : vector<100x128xf32>
    %c0_22 = arith.constant 0 : index
    %c42 = arith.constant 42 : index
    %c0_23 = arith.constant 0 : index
    %25 = vector.load %arg1[%c0_22, %c42, %c0_23] : memref<1x184x4xbf16, #tpu.memory_space<vmem>>, vector<1x100x4xbf16>
    %26 = vector.shape_cast %25 : vector<1x100x4xbf16> to vector<100x4xbf16>
    %c4_24 = arith.constant 4 : index
    %c0_25 = arith.constant 0 : index
    %c0_26 = arith.constant 0 : index
    %27 = vector.load %arg2[%c4_24, %c0_25, %c0_26] : memref<9x4x128xbf16, #tpu.memory_space<vmem>>, vector<1x4x128xbf16>
    %28 = vector.shape_cast %27 : vector<1x4x128xbf16> to vector<4x128xbf16>
    %cst_27 = arith.constant dense<0.000000e+00> : vector<100x128xf32>
    %29 = tpu.matmul %26, %28, %cst_27 {dimension_numbers = #tpu.dot_dimension_numbers<[1], [0], [0], [1], [0, 0, 1, 1], [], []>} : vector<100x4xbf16>, vector<4x128xbf16>, vector<100x128xf32> -> vector<100x128xf32>
    %30 = arith.addf %24, %29 : vector<100x128xf32>
    %c0_28 = arith.constant 0 : index
    %c44 = arith.constant 44 : index
    %c0_29 = arith.constant 0 : index
    %31 = vector.load %arg1[%c0_28, %c44, %c0_29] : memref<1x184x4xbf16, #tpu.memory_space<vmem>>, vector<1x100x4xbf16>
    %32 = vector.shape_cast %31 : vector<1x100x4xbf16> to vector<100x4xbf16>
    %c5 = arith.constant 5 : index
    %c0_30 = arith.constant 0 : index
    %c0_31 = arith.constant 0 : index
    %33 = vector.load %arg2[%c5, %c0_30, %c0_31] : memref<9x4x128xbf16, #tpu.memory_space<vmem>>, vector<1x4x128xbf16>
    %34 = vector.shape_cast %33 : vector<1x4x128xbf16> to vector<4x128xbf16>
    %cst_32 = arith.constant dense<0.000000e+00> : vector<100x128xf32>
    %35 = tpu.matmul %32, %34, %cst_32 {dimension_numbers = #tpu.dot_dimension_numbers<[1], [0], [0], [1], [0, 0, 1, 1], [], []>} : vector<100x4xbf16>, vector<4x128xbf16>, vector<100x128xf32> -> vector<100x128xf32>
    %36 = arith.addf %30, %35 : vector<100x128xf32>
    %c0_33 = arith.constant 0 : index
    %c80 = arith.constant 80 : index
    %c0_34 = arith.constant 0 : index
    %37 = vector.load %arg1[%c0_33, %c80, %c0_34] : memref<1x184x4xbf16, #tpu.memory_space<vmem>>, vector<1x100x4xbf16>
    %38 = vector.shape_cast %37 : vector<1x100x4xbf16> to vector<100x4xbf16>
    %c6 = arith.constant 6 : index
    %c0_35 = arith.constant 0 : index
    %c0_36 = arith.constant 0 : index
    %39 = vector.load %arg2[%c6, %c0_35, %c0_36] : memref<9x4x128xbf16, #tpu.memory_space<vmem>>, vector<1x4x128xbf16>
    %40 = vector.shape_cast %39 : vector<1x4x128xbf16> to vector<4x128xbf16>
    %cst_37 = arith.constant dense<0.000000e+00> : vector<100x128xf32>
    %41 = tpu.matmul %38, %40, %cst_37 {dimension_numbers = #tpu.dot_dimension_numbers<[1], [0], [0], [1], [0, 0, 1, 1], [], []>} : vector<100x4xbf16>, vector<4x128xbf16>, vector<100x128xf32> -> vector<100x128xf32>
    %42 = arith.addf %36, %41 : vector<100x128xf32>
    %c0_38 = arith.constant 0 : index
    %c82 = arith.constant 82 : index
    %c0_39 = arith.constant 0 : index
    %43 = vector.load %arg1[%c0_38, %c82, %c0_39] : memref<1x184x4xbf16, #tpu.memory_space<vmem>>, vector<1x100x4xbf16>
    %44 = vector.shape_cast %43 : vector<1x100x4xbf16> to vector<100x4xbf16>
    %c7 = arith.constant 7 : index
    %c0_40 = arith.constant 0 : index
    %c0_41 = arith.constant 0 : index
    %45 = vector.load %arg2[%c7, %c0_40, %c0_41] : memref<9x4x128xbf16, #tpu.memory_space<vmem>>, vector<1x4x128xbf16>
    %46 = vector.shape_cast %45 : vector<1x4x128xbf16> to vector<4x128xbf16>
    %cst_42 = arith.constant dense<0.000000e+00> : vector<100x128xf32>
    %47 = tpu.matmul %44, %46, %cst_42 {dimension_numbers = #tpu.dot_dimension_numbers<[1], [0], [0], [1], [0, 0, 1, 1], [], []>} : vector<100x4xbf16>, vector<4x128xbf16>, vector<100x128xf32> -> vector<100x128xf32>
    %48 = arith.addf %42, %47 : vector<100x128xf32>
    %c0_43 = arith.constant 0 : index
    %c84 = arith.constant 84 : index
    %c0_44 = arith.constant 0 : index
    %49 = vector.load %arg1[%c0_43, %c84, %c0_44] : memref<1x184x4xbf16, #tpu.memory_space<vmem>>, vector<1x100x4xbf16>
    %50 = vector.shape_cast %49 : vector<1x100x4xbf16> to vector<100x4xbf16>
    %c8 = arith.constant 8 : index
    %c0_45 = arith.constant 0 : index
    %c0_46 = arith.constant 0 : index
    %51 = vector.load %arg2[%c8, %c0_45, %c0_46] : memref<9x4x128xbf16, #tpu.memory_space<vmem>>, vector<1x4x128xbf16>
    %52 = vector.shape_cast %51 : vector<1x4x128xbf16> to vector<4x128xbf16>
    %cst_47 = arith.constant dense<0.000000e+00> : vector<100x128xf32>
    %53 = tpu.matmul %50, %52, %cst_47 {dimension_numbers = #tpu.dot_dimension_numbers<[1], [0], [0], [1], [0, 0, 1, 1], [], []>} : vector<100x4xbf16>, vector<4x128xbf16>, vector<100x128xf32> -> vector<100x128xf32>
    %54 = arith.addf %48, %53 : vector<100x128xf32>
    %55 = arith.truncf %54 : vector<100x128xf32> to vector<100x128xbf16>
    %c0_48 = arith.constant 0 : index
    %c0_49 = arith.constant 0 : index
    %c0_50 = arith.constant 0 : index
    %56 = vector.load %arg4[%c0_48, %c0_49, %c0_50] : memref<1x100x128xbf16, #tpu.memory_space<vmem>>, vector<1x100x128xbf16>
    %57 = vector.shape_cast %56 : vector<1x100x128xbf16> to vector<100x128xbf16>
    %58 = vector.shape_cast %55 : vector<100x128xbf16> to vector<1x100x128xbf16>
    tpu.vector_store %arg4[%c0_48, %c0_49, %c0_50], %58 {strides = array<i32>} : memref<1x100x128xbf16, #tpu.memory_space<vmem>>, vector<1x100x128xbf16>,
    %c0_51 = arith.constant 0 : index
    %c0_52 = arith.constant 0 : index
    %c0_53 = arith.constant 0 : index
    %59 = vector.load %arg3[%c0_51, %c0_52, %c0_53] : memref<1x100x1xf32, #tpu.memory_space<vmem>>, vector<1x100x1xf32>
    %60 = vector.shape_cast %59 : vector<1x100x1xf32> to vector<100x1xf32>
    %61 = vector.broadcast %60 : vector<100x1xf32> to vector<100x128xf32>
    %62 = arith.mulf %54, %61 : vector<100x128xf32>
    %cst_54 = arith.constant dense<0.000000e+00> : vector<128xf32>
    %63 = vector.multi_reduction <add>, %62, %cst_54 [0] : vector<100x128xf32> to vector<128xf32>
    %64 = vector.shape_cast %63 : vector<128xf32> to vector<1x128xf32>
    %c0_55 = arith.constant 0 : index
    %c0_56 = arith.constant 0 : index
    %c0_57 = arith.constant 0 : index
    %65 = vector.load %arg5[%c0_55, %c0_56, %c0_57] : memref<1x1x128xf32, #tpu.memory_space<vmem>>, vector<1x1x128xf32>
    %66 = vector.shape_cast %65 : vector<1x1x128xf32> to vector<1x128xf32>
    %67 = vector.shape_cast %64 : vector<1x128xf32> to vector<1x1x128xf32>
    tpu.vector_store %arg5[%c0_55, %c0_56, %c0_57], %67 {strides = array<i32>} : memref<1x1x128xf32, #tpu.memory_space<vmem>>, vector<1x1x128xf32>,
    %68 = arith.mulf %62, %54 : vector<100x128xf32>
    %cst_58 = arith.constant dense<0.000000e+00> : vector<128xf32>
    %69 = vector.multi_reduction <add>, %68, %cst_58 [0] : vector<100x128xf32> to vector<128xf32>
    %70 = vector.shape_cast %69 : vector<128xf32> to vector<1x128xf32>
    %c0_59 = arith.constant 0 : index
    %c0_60 = arith.constant 0 : index
    %c0_61 = arith.constant 0 : index
    %71 = vector.load %arg6[%c0_59, %c0_60, %c0_61] : memref<1x1x128xf32, #tpu.memory_space<vmem>>, vector<1x1x128xf32>
    %72 = vector.shape_cast %71 : vector<1x1x128xf32> to vector<1x128xf32>
    %73 = vector.shape_cast %70 : vector<1x128xf32> to vector<1x1x128xf32>
    tpu.vector_store %arg6[%c0_59, %c0_60, %c0_61], %73 {strides = array<i32>} : memref<1x1x128xf32, #tpu.memory_space<vmem>>, vector<1x1x128xf32>,
    return
  }
  func.func @transform_0(%arg0: i32) -> (i32, i32, i32) {
    %c0_i32 = arith.constant 0 : i32
    %c0_i32_0 = arith.constant 0 : i32
    %c0_i32_1 = arith.constant 0 : i32
    return %arg0, %c0_i32, %c0_i32_0 : i32, i32, i32
  }
  func.func @transform_1(%arg0: i32) -> (i32, i32, i32) {
    %c0_i32 = arith.constant 0 : i32
    %c0_i32_0 = arith.constant 0 : i32
    %c0_i32_1 = arith.constant 0 : i32
    %c0_i32_2 = arith.constant 0 : i32
    return %c0_i32, %c0_i32_0, %c0_i32_1 : i32, i32, i32
  }
  func.func @transform_2(%arg0: i32) -> (i32, i32, i32) {
    %c4_i32 = arith.constant 4 : i32
    %c0_i32 = arith.constant 0 : i32
    %0 = arith.cmpi eq, %c4_i32, %c0_i32 : i32
    %c1_i32 = arith.constant 1 : i32
    %1 = arith.select %0, %c1_i32, %c4_i32 : i32
    %2 = arith.remsi %arg0, %1 : i32
    %c0_i32_0 = arith.constant 0 : i32
    %3 = arith.cmpi ne, %2, %c0_i32_0 : i32
    %c0_i32_1 = arith.constant 0 : i32
    %4 = arith.cmpi slt, %2, %c0_i32_1 : i32
    %c0_i32_2 = arith.constant 0 : i32
    %5 = arith.cmpi slt, %1, %c0_i32_2 : i32
    %6 = arith.xori %4, %5 : i1
    %7 = arith.andi %6, %3 : i1
    %8 = arith.addi %2, %1 : i32
    %9 = arith.select %7, %8, %2 : i32
    %c0_i32_3 = arith.constant 0 : i32
    %c0_i32_4 = arith.constant 0 : i32
    %c0_i32_5 = arith.constant 0 : i32
    return %9, %c0_i32_3, %c0_i32_4 : i32, i32, i32
  }
  func.func @transform_3(%arg0: i32) -> (i32, i32, i32) {
    %c0_i32 = arith.constant 0 : i32
    %c0_i32_0 = arith.constant 0 : i32
    %c0_i32_1 = arith.constant 0 : i32
    return %arg0, %c0_i32, %c0_i32_0 : i32, i32, i32
  }
  func.func @transform_4(%arg0: i32) -> (i32, i32, i32) {
    %c0_i32 = arith.constant 0 : i32
    %c0_i32_0 = arith.constant 0 : i32
    %c0_i32_1 = arith.constant 0 : i32
    return %arg0, %c0_i32, %c0_i32_0 : i32, i32, i32
  }
  func.func @transform_5(%arg0: i32) -> (i32, i32, i32) {
    %c0_i32 = arith.constant 0 : i32
    %c0_i32_0 = arith.constant 0 : i32
    %c0_i32_1 = arith.constant 0 : i32
    return %arg0, %c0_i32, %c0_i32_0 : i32, i32, i32
  }
}

module attributes {stable_mosaic.version = 11 : i64} {
  func.func @_bn_relu_kernel(%arg0: i32, %arg1: memref<1x100x128xbf16, #tpu.memory_space<vmem>>, %arg2: memref<1x128xf32, #tpu.memory_space<vmem>>, %arg3: memref<1x128xf32, #tpu.memory_space<vmem>>, %arg4: memref<1x100x128xf32, #tpu.memory_space<vmem>>) attributes {dimension_semantics = [#tpu.dimension_semantics<parallel>], iteration_bounds = array<i64: 8>, scalar_prefetch = 0 : i64, scratch_operands = 0 : i64, tpu.core_type = #tpu.core_type<tc>, window_params = [{transform_indices = @transform_0, window_bounds = array<i64: 1, 100, 128>}, {pipeline_mode = #tpu.pipeline_mode<synchronous>, transform_indices = @transform_1, window_bounds = array<i64: 1, 128>}, {pipeline_mode = #tpu.pipeline_mode<synchronous>, transform_indices = @transform_2, window_bounds = array<i64: 1, 128>}, {transform_indices = @transform_3, window_bounds = array<i64: 1, 100, 128>}]} {
    %c0 = arith.constant 0 : index
    %c0_0 = arith.constant 0 : index
    %c0_1 = arith.constant 0 : index
    %0 = vector.load %arg1[%c0, %c0_0, %c0_1] : memref<1x100x128xbf16, #tpu.memory_space<vmem>>, vector<1x100x128xbf16>
    %1 = vector.shape_cast %0 : vector<1x100x128xbf16> to vector<100x128xbf16>
    %2 = arith.extf %1 : vector<100x128xbf16> to vector<100x128xf32>
    %c0_2 = arith.constant 0 : index
    %c0_3 = arith.constant 0 : index
    %3 = vector.load %arg2[%c0_2, %c0_3] : memref<1x128xf32, #tpu.memory_space<vmem>>, vector<1x128xf32>
    %4 = vector.broadcast %3 : vector<1x128xf32> to vector<100x128xf32>
    %5 = arith.mulf %2, %4 : vector<100x128xf32>
    %c0_4 = arith.constant 0 : index
    %c0_5 = arith.constant 0 : index
    %6 = vector.load %arg3[%c0_4, %c0_5] : memref<1x128xf32, #tpu.memory_space<vmem>>, vector<1x128xf32>
    %7 = vector.broadcast %6 : vector<1x128xf32> to vector<100x128xf32>
    %8 = arith.addf %5, %7 : vector<100x128xf32>
    %cst = arith.constant 0.000000e+00 : f32
    %9 = vector.broadcast %cst : f32 to vector<100x128xf32>
    %10 = arith.maximumf %8, %9 : vector<100x128xf32>
    %c0_6 = arith.constant 0 : index
    %c0_7 = arith.constant 0 : index
    %c0_8 = arith.constant 0 : index
    %11 = vector.load %arg4[%c0_6, %c0_7, %c0_8] : memref<1x100x128xf32, #tpu.memory_space<vmem>>, vector<1x100x128xf32>
    %12 = vector.shape_cast %11 : vector<1x100x128xf32> to vector<100x128xf32>
    %13 = vector.shape_cast %10 : vector<100x128xf32> to vector<1x100x128xf32>
    tpu.vector_store %arg4[%c0_6, %c0_7, %c0_8], %13 {strides = array<i32>} : memref<1x100x128xf32, #tpu.memory_space<vmem>>, vector<1x100x128xf32>,
    return
  }
  func.func @transform_0(%arg0: i32) -> (i32, i32, i32) {
    %c0_i32 = arith.constant 0 : i32
    %c0_i32_0 = arith.constant 0 : i32
    %c0_i32_1 = arith.constant 0 : i32
    return %arg0, %c0_i32, %c0_i32_0 : i32, i32, i32
  }
  func.func @transform_1(%arg0: i32) -> (i32, i32) {
    %c0_i32 = arith.constant 0 : i32
    %c0_i32_0 = arith.constant 0 : i32
    %c0_i32_1 = arith.constant 0 : i32
    return %c0_i32, %c0_i32_0 : i32, i32
  }
  func.func @transform_2(%arg0: i32) -> (i32, i32) {
    %c0_i32 = arith.constant 0 : i32
    %c0_i32_0 = arith.constant 0 : i32
    %c0_i32_1 = arith.constant 0 : i32
    return %c0_i32, %c0_i32_0 : i32, i32
  }
  func.func @transform_3(%arg0: i32) -> (i32, i32, i32) {
    %c0_i32 = arith.constant 0 : i32
    %c0_i32_0 = arith.constant 0 : i32
    %c0_i32_1 = arith.constant 0 : i32
    return %arg0, %c0_i32, %c0_i32_0 : i32, i32, i32
  }
}

</mosaic_0001>

<bundles_post_ra>
// kernel: conv_block_pallas.3
= control target key start
LH: loop header
LB: loop body
LE: loop exit
PB: predicated region body
PF: predicated region fallthrough
CT: control target
= control target key end

     0   :  { %8 = vsyncpa [#allocation3], 0  ;;  %s975_s0 = inlined_call_operand.hbm [shape: bf16[8,100,128], index: 0, kind: input, shape index: {}]   ;;  %s976_s1 = inlined_call_operand.hbm [shape: f32[1,128], index: 1, kind: input, shape index: {}]   ;;  %s977_s2 = inlined_call_operand.hbm [shape: f32[1,128], index: 2, kind: input, shape index: {}]   ;;  %s978_s3 = inlined_call_operand.hbm [shape: f32[8,100,128], index: 3, kind: output, shape index: {}]  }
   0x1   :  { %10 = vsyncpa [#allocation3 + $0x1], 0 }
   0x2   :  { %11 = vsyncpa [#allocation6], 0 }
   0x3   :  { %12 = vsyncpa [#allocation4], 0 }
   0x4   :  { %14 = vsyncpa [#allocation4 + $0x1], 0  ;;  %s717_s12 = smov 0   ;;  %s719_s13 = smov 0  }
   0x5   :  { %s721_s14 = smov 0   ;;  %s723_s15 = smov 0  }
   0x6 LB: > { %s738_s16 = sadd.s32 4294967295, %s687_s15   ;;  %s412_s17 = sadd.s32 4294967294, %s687_s15   ;;  %s687_s15 = sphi %s723_s15, %s1001_s15   ;;  %s683_s14 = sphi %s721_s14, %s1000_s14   ;;  %s679_s13 = sphi %s719_s13, %s999_s13   ;;  %s675_s12 = sphi %s717_s12, %s998_s12  }
   0x7   : > { %s742_s18 = sadd.s32 1, %s687_s15   ;;  %s27_s19 = sadd.s32 1, %s683_s14 }
   0x8   : > { %s24_s20 = ssub.s32 %s687_s15, %s742_s18  ;;  %p34_p0 = scmp.ne.s32.totalorder %s683_s14, %s679_s13 }
   0x9   : > { %p25_p1 = scmp.eq.s32.totalorder %s24_s20, 0  ;;  %p35_p2 = scmp.eq.s32.totalorder %s687_s15, 0 }
   0xa   : > { %p40_p3 = scmp.ne.s32.totalorder %s679_s13, %s675_s12  ;;  %p979_p4 = scmp.eq.s32.totalorder %s738_s16, 0 }
   0xb   : > { %s754_s21 = scalar_select %p25_p1, %s683_s14, %s27_s19  }
   0xc   : > { %p756_p5 = por %p35_p2, %p34_p0  ;;  %p762_p6 = por %p979_p4, %p40_p3 }
   0xd   : > { %p106_p7 = scmp.eq.s32.totalorder %s738_s16, 7  ;;  %p112_p8 = scmp.eq.s32.totalorder %s412_s17, 7 }
   0xe   : > { %s985_s23 = scalar_select %p762_p6, 1, 0 }
   0xf   : > { %p413_p9 = scmp.ge.s32.totalorder %s687_s15, 1  ;;  %p119_p10 = scmp.lt.s32.totalorder %s687_s15, 9 }
  0x10   : > { %p769_p11 = por %p106_p7, %p34_p0  ;;  %p773_p12 = por %p112_p8, %p40_p3 }
  0x11   : > { %p777_p13 = pnand %p413_p9, %p119_p10  ;;  %s689_s27 = smov [#allocation5]  }
  0x12   : > { %s986_s24 = scalar_select %p769_p11, 1, 0 }
  0x13   : > { %s987_s25 = scalar_select %p773_p12, 1, 0 }
  0x14   : > { %s988_s26 = scalar_select %p777_p13, 1, 0 }
  0x15   : > { %p472_p1 = pneg %p777_p13  ;;  %s132_s28 = sshll.u32 %s689_s27, 4  ;;  %s133_s28 = int_to_ptr.vmem [resolvable:$true] %s132_s28 }
  0x16   : > { %p489_p2 = scmp.lt.s32.totalorder %s687_s15, 8  ;;  %s690_s4 = smov [#allocation7]  }
  0x17   : > { %p786_p0 = pnand %p472_p1, %p979_p4  ;;  %s143_s5 = sshll.u32 %s690_s4, 4  ;;  %s796_s5 = int_to_ptr.vmem [resolvable:$true] %s143_s5 }
  0x18   : > { %p792_p3 = pnand %p489_p2, %p756_p5  ;;  %s531_s8 = scalar_lea.hbm %s976_s1, 16 }
  0x19   : > { %p532_p7 = scmp.ne.s32.totalorder %s976_s1, %s531_s8  ;;  %p533_p8 = pneg %p786_p0 }
  0x1a   : > { %s990_s30 = scalar_select %p792_p3, 1, 0 }
  0x1b   : > { %p534_p5 = pnand %p533_p8, %p532_p7  ;;  %p538_p10 = scmp.lt.u32.totalorder %s531_s8, %s976_s1 }
  0x1d   : > { %p535_p9 = pneg %p534_p5 }
  0x1f   : > { %p540_p1 = pnand %p538_p10, %p535_p9 }
  0x21   : > { %543 = shalt.err (!%p540_p1)
}
  0x22   : > { %s544_s19 = scalar_lea.vmem %s133_s28, 16  ;;  %s551_s20 = scalar_lea.vmem %s133_s28, 32 }
  0x23   : > { %p545_p2 = scmp.ne.s32.totalorder %s133_s28, %s544_s19  ;;  %p552_p11 = scmp.lt.s32.totalorder %s133_s28, %s133_s28 }
  0x24   : > { %p553_p6 = scmp.lt.s32.totalorder %s551_s20, %s544_s19 }
  0x25   : > { %p547_p4 = pnand %p545_p2, %p533_p8 }
  0x26   : > { %p554_p13 = por %p553_p6, %p552_p11 }
  0x27   : > { %p548_p12 = pneg %p547_p4 }
  0x29   : > { %p555_p3 = pnand %p554_p13, %p548_p12 }
  0x2b   : > { %558 = shalt.err (!%p555_p3)
}
  0x2c   : > { %475 = dma.hbm_to_vmem [thread:$0]  (!%p786_p0), %s976_s1, 16, %s133_s28, [#allocation6]  }
  0x2d   : > { %s154_s4 = sand.u32 1, %s683_s14   ;;  %s559_s8 = scalar_lea.hbm %s977_s2, 16 }
  0x2e   : > { %p560_p4 = scmp.ne.s32.totalorder %s977_s2, %s559_s8  ;;  %p566_p12 = scmp.lt.u32.totalorder %s559_s8, %s977_s2 }
  0x30   : > { %p562_p6 = pnand %p560_p4, %p533_p8 }
  0x32   : > { %p563_p11 = pneg %p562_p6 }
  0x34   : > { %p568_p13 = pnand %p566_p12, %p563_p11 }
  0x36   : > { %571 = shalt.err (!%p568_p13)
}
  0x37   : > { %s572_s28 = scalar_lea.vmem %s796_s5, 16  ;;  %s579_s19 = scalar_lea.vmem %s796_s5, 32 }
  0x38   : > { %p573_p3 = scmp.ne.s32.totalorder %s796_s5, %s572_s28  ;;  %p580_p9 = scmp.lt.s32.totalorder %s796_s5, %s796_s5 }
  0x39   : > { %p581_p10 = scmp.lt.s32.totalorder %s579_s19, %s572_s28 }
  0x3a   : > { %p575_p7 = pnand %p573_p3, %p533_p8 }
  0x3b   : > { %p582_p1 = por %p581_p10, %p580_p9 }
  0x3c   : > { %p576_p5 = pneg %p575_p7 }
  0x3e   : > { %p583_p2 = pnand %p582_p1, %p576_p5 }
  0x40   : > { %586 = shalt.err (!%p583_p2)
}
  0x41   : > { %478 = dma.hbm_to_vmem [thread:$0]  (!%p786_p0), %s977_s2, 16, %s796_s5, [#allocation6]  }
  0x42   : > { %s455_s27 = smul.u32 52, %s154_s4  ;;  %s855_s11 = scalar_lea.sflag [#allocation3], %s154_s4 }
  0x43   : > { %s456_s6 = smul.u32 832, %s687_s15  ;;  %p991_p0 = scmp.ne.s32.totalorder %s990_s30, 0 }
  0x44   : > { %s158_s29 = scalar_lea.vmem [#allocation2], %s455_s27  ;;  %s592_s19 = scalar_lea.hbm %s975_s0, 6656 }
  0x45   : > { %s851_s9 = scalar_lea.hbm %s975_s0, %s456_s6  ;;  %s165_s10 = sshll.u32 %s158_s29, 4  ;;  %s853_s10 = int_to_ptr.vmem [resolvable:$true] %s165_s10 }
  0x46   : > { %s587_s17 = scalar_lea.hbm %s851_s9, 832  ;;  %p589_p4 = pneg %p991_p0 }
  0x47   : > { %p588_p8 = scmp.ne.s32.totalorder %s851_s9, %s587_s17  ;;  %p593_p12 = scmp.lt.u32.totalorder %s851_s9, %s975_s0 }
  0x48   : > { %p594_p13 = scmp.lt.u32.totalorder %s592_s19, %s587_s17  ;;  %p596_p7 = scmp.lt.u32.totalorder %s587_s17, %s851_s9 }
  0x49   : > { %p590_p6 = pnand %p589_p4, %p588_p8 }
  0x4a   : > { %p595_p3 = por %p594_p13, %p593_p12 }
  0x4b   : > { %p591_p11 = pneg %p590_p6 }
  0x4c   : > { %p597_p5 = por %p596_p7, %p595_p3 }
  0x4e   : > { %p598_p9 = pnand %p597_p5, %p591_p11 }
  0x50   : > { %601 = shalt.err (!%p598_p9)
}
  0x51   : > { %s602_s4 = scalar_lea.vmem %s853_s10, 832  ;;  %s691_s27 = smov [#allocation2]  }
  0x52   : > { %p603_p10 = scmp.ne.s32.totalorder %s853_s10, %s602_s4  ;;  %s607_s6 = sshll.u32 %s691_s27, 4  ;;  %s608_s6 = int_to_ptr.vmem [resolvable:$false] %s607_s6 }
  0x53   : > { %s609_s7 = scalar_lea.vmem %s608_s6, 1664  ;;  %p610_p8 = scmp.lt.s32.totalorder %s853_s10, %s608_s6 }
  0x54   : > { %p605_p1 = pnand %p603_p10, %p589_p4  ;;  %p611_p6 = scmp.lt.s32.totalorder %s609_s7, %s602_s4 }
  0x56   : > { %p606_p2 = pneg %p605_p1  ;;  %p612_p12 = por %p611_p6, %p610_p8 }
  0x58   : > { %p613_p13 = pnand %p612_p12, %p606_p2 }
  0x5a   : > { %616 = shalt.err (!%p613_p13)
}
  0x5b   : > { %s692_s8 = smov 64   ;;  %s693_s29 = smov 4  }
  0x5c   : > { %482 = dma.hbm_to_vmem [thread:$0]  (!%p991_p0), %s851_s9, 832, %s853_s10, %s855_s11, %s692_s8, %s692_s8, %s693_s29  }
  0x5d   : > { %p992_p4 = scmp.ne.s32.totalorder %s988_s26, 0 }
  0x5e   : > { %s886_s17 = sand.u32 (!%p992_p4), 1, %s679_s13   ;;  %p993_p11 = scmp.ne.s32.totalorder (!%p992_p4), %s985_s23, 0 }
  0x5f   : > { %177 = sbr.rel (%p992_p4) target bundleno = 140 (0x8c), region = 32  ;;  %s180_s28 = scalar_lea.sflag (!%p992_p4), [#allocation3], %s886_s17 }
  0x60   : > { %s457_s5 = smul.u32 (!%p992_p4), 52, %s886_s17 }
  0x62   : > { %s890_s19 = scalar_lea.vmem (!%p992_p4), [#allocation2], %s457_s5 }
  0x66   : > { %662 = dma.done.wait (%p993_p11), %s180_s28, 832  }
  0x67   : > { %664 = vsyncadd (%p993_p11), %s180_s28, 4294966464  ;;  %p994_p0 = scmp.eq.s32.totalorder %s738_s16, 0 }
  0x69   : > { %666 = dma.done.wait (%p994_p0), [#allocation6], 32   ;;  %p995_p3 = pmov %p994_p0 }
  0x6a   : > { %v427_v0 = vld [vmem:[%s890_s19] sm:$0xff]   ;;  %v421_v1 = vld [vmem:[#allocation5] ss:$0 sm:$0xff]  ;;  %v452_v6 = vld [vmem:[%s890_s19 + $0x18] sm:$0xff]   ;;  %s458_s23 = smul.u32 104, %s886_s17  ;;  %s307_s20 = scalar_lea.sflag [#allocation4], %s886_s17 }
  0x6b   : > { %668 = vsyncadd (%p995_p3), [#allocation6], 4294967264  ;;  %v428_v2 = vunpack.c.l.bf16 %v427_v0  ;;  %v429_v3 = vunpack.c.h.bf16 %v427_v0  ;;  %v450_v4 = vld [vmem:[%s890_s19 + $0x8] sm:$0xff]   ;;  %v451_v5 = vld [vmem:[%s890_s19 + $0x10] sm:$0xff]   ;;  %v440_v14 = vunpack.c.l.bf16 %v452_v6  ;;  %v441_v15 = vunpack.c.h.bf16 %v452_v6  ;;  %s459_s30 = smul.u32 1664, %s738_s16  ;;  %p996_p5 = scmp.ne.s32.totalorder %s986_s24, 0 }
  0x6c   : > { %v422_v7 = vld [vmem:[#allocation7] ss:$0 sm:$0xff]  ;;  %v432_v8 = vunpack.c.l.bf16 %v450_v4  ;;  %v433_v9 = vunpack.c.h.bf16 %v450_v4  ;;  %v436_v10 = vunpack.c.l.bf16 %v451_v5  ;;  %v437_v11 = vunpack.c.h.bf16 %v451_v5  ;;  %v453_v28 = vld [vmem:[%s890_s19 + $0x20] sm:$0xff]   ;;  %v226_v34 = vld [vmem:[%s890_s19 + $0x30] sm:$0x3]  ;;  %s910_s26 = scalar_lea.vmem [#allocation8], %s458_s23 }
  0x6d   : > { %v247_v12 = vmul.f32 %v428_v2, %v421_v1  ;;  %v248_v13 = vmul.f32 %v429_v3, %v421_v1  ;;  %v253_v22 = vmul.f32 %v440_v14, %v421_v1  ;;  %v254_v23 = vmul.f32 %v441_v15, %v421_v1  ;;  %v454_v33 = vld [vmem:[%s890_s19 + $0x28] sm:$0xff]   ;;  %s320_s9 = sshll.u32 %s910_s26, 4  ;;  %s925_s16 = scalar_lea.hbm %s978_s3, %s459_s30  ;;  %s927_s9 = int_to_ptr.vmem [resolvable:$true] %s320_s9 }
  0x6e   : > { %v249_v16 = vmul.f32 %v432_v8, %v421_v1  ;;  %v250_v17 = vmul.f32 %v433_v9, %v421_v1  ;;  %v251_v18 = vmul.f32 %v436_v10, %v421_v1  ;;  %v252_v19 = vmul.f32 %v437_v11, %v421_v1  ;;  %s617_s22 = scalar_lea.vmem %s927_s9, 1664  ;;  %s694_s4 = smov [#allocation8]  }
  0x6f   : > { %v267_v20 = vadd.f32 %v422_v7, %v247_v12  ;;  %v268_v21 = vadd.f32 %v422_v7, %v248_v13  ;;  %v273_v31 = vadd.f32 %v422_v7, %v253_v22  ;;  %v274_v32 = vadd.f32 %v422_v7, %v254_v23  ;;  %p618_p7 = scmp.ne.s32.totalorder %s927_s9, %s617_s22  ;;  %s621_s27 = sshll.u32 %s694_s4, 4  ;;  %s622_s27 = int_to_ptr.vmem [resolvable:$false] %s621_s27 }
  0x70   : > { %v269_v24 = vadd.f32 %v422_v7, %v249_v16  ;;  %v270_v25 = vadd.f32 %v422_v7, %v250_v17  ;;  %v271_v26 = vadd.f32 %v422_v7, %v251_v18  ;;  %v272_v27 = vadd.f32 %v422_v7, %v252_v19  ;;  %s623_s6 = scalar_lea.vmem %s622_s27, 3328  ;;  %p624_p1 = scmp.lt.s32.totalorder %s927_s9, %s622_s27 }
  0x71   : > { %v280_v29 = vmax.f32 %v267_v20, 0.0  ;;  %v281_v30 = vmax.f32 %v268_v21, 0.0  ;;  %v286_v39 = vmax.f32 %v273_v31, 0.0  ;;  %v287_v40 = vmax.f32 %v274_v32, 0.0  ;;  %p619_p9 = pnand %p618_p7, %p996_p5  ;;  %p625_p2 = scmp.lt.s32.totalorder %s623_s6, %s617_s22 }
  0x72   : > { %v282_v35 = vmax.f32 %v269_v24, 0.0  ;;  %v283_v36 = vmax.f32 %v270_v25, 0.0  ;;  %v284_v37 = vmax.f32 %v271_v26, 0.0  ;;  %v285_v38 = vmax.f32 %v272_v27, 0.0 }
  0x73   : > { %293 = vst [vmem:[%s910_s26] sm:$0xff] %v280_v29  ;;  %294 = vst [vmem:[%s910_s26 + $0x8] sm:$0xff] %v281_v30  ;;  %v444_v41 = vunpack.c.l.bf16 %v453_v28  ;;  %v445_v42 = vunpack.c.h.bf16 %v453_v28  ;;  %v448_v43 = vunpack.c.l.bf16 %v454_v33  ;;  %v449_v44 = vunpack.c.h.bf16 %v454_v33  ;;  %p620_p10 = pneg %p619_p9  ;;  %p626_p8 = por %p625_p2, %p624_p1 }
  0x74   : > { %295 = vst [vmem:[%s910_s26 + $0x10] sm:$0xff] %v282_v35  ;;  %296 = vst [vmem:[%s910_s26 + $0x18] sm:$0xff] %v283_v36  ;;  %v239_v45 = vunpack.c.l.bf16 %v226_v34 }
  0x75   : > { %297 = vst [vmem:[%s910_s26 + $0x20] sm:$0xff] %v284_v37  ;;  %298 = vst [vmem:[%s910_s26 + $0x28] sm:$0xff] %v285_v38  ;;  %v255_v46 = vmul.f32 %v444_v41, %v421_v1  ;;  %v256_v47 = vmul.f32 %v445_v42, %v421_v1  ;;  %v257_v48 = vmul.f32 %v448_v43, %v421_v1  ;;  %p627_p6 = pnand %p626_p8, %p620_p10 }
  0x76   : > { %299 = vst [vmem:[%s910_s26 + $0x30] sm:$0xff] %v286_v39  ;;  %300 = vst [vmem:[%s910_s26 + $0x38] sm:$0xff] %v287_v40  ;;  %v258_v49 = vmul.f32 %v449_v44, %v421_v1  ;;  %v259_v50 = vmul.f32 %v421_v1, %v239_v45 }
  0x77   : > { %v275_v51 = vadd.f32 %v422_v7, %v255_v46  ;;  %v276_v52 = vadd.f32 %v422_v7, %v256_v47  ;;  %v277_v53 = vadd.f32 %v422_v7, %v257_v48 }
  0x78   : > { %v278_v54 = vadd.f32 %v422_v7, %v258_v49  ;;  %v279_v55 = vadd.f32 %v422_v7, %v259_v50 }
  0x79   : > { %v288_v56 = vmax.f32 %v275_v51, 0.0  ;;  %v289_v57 = vmax.f32 %v276_v52, 0.0  ;;  %v290_v58 = vmax.f32 %v277_v53, 0.0 }
  0x7a   : > { %v291_v59 = vmax.f32 %v278_v54, 0.0  ;;  %v292_v60 = vmax.f32 %v279_v55, 0.0 }
  0x7b   : > { %301 = vst [vmem:[%s910_s26 + $0x40] sm:$0xff] %v288_v56  ;;  %302 = vst [vmem:[%s910_s26 + $0x48] sm:$0xff] %v289_v57 }
  0x7c   : > { %303 = vst [vmem:[%s910_s26 + $0x50] sm:$0xff] %v290_v58  ;;  %304 = vst [vmem:[%s910_s26 + $0x58] sm:$0xff] %v291_v59 }
  0x7d   : > { %305 = vst [vmem:[%s910_s26 + $0x60] sm:$0xf] %v292_v60 }
  0x7e   : > { %630 = shalt.err (!%p627_p6)
}
  0x7f   : > { %s631_s7 = scalar_lea.hbm %s925_s16, 1664  ;;  %s635_s5 = scalar_lea.hbm %s978_s3, 13312 }
  0x80   : > { %p632_p12 = scmp.ne.s32.totalorder %s925_s16, %s631_s7  ;;  %p636_p11 = scmp.lt.u32.totalorder %s925_s16, %s978_s3 }
  0x81   : > { %p637_p0 = scmp.lt.u32.totalorder %s635_s5, %s631_s7  ;;  %p639_p7 = scmp.lt.u32.totalorder %s631_s7, %s925_s16 }
  0x82   : > { %p633_p13 = pnand %p632_p12, %p996_p5 }
  0x83   : > { %p638_p3 = por %p637_p0, %p636_p11 }
  0x84   : > { %p634_p4 = pneg %p633_p13 }
  0x85   : > { %p640_p9 = por %p639_p7, %p638_p3 }
  0x87   : > { %p641_p10 = pnand %p640_p9, %p634_p4 }
  0x89   : > { %644 = shalt.err (!%p641_p10)
}
  0x8a   : > { %s695_s23 = smov 128   ;;  %s696_s26 = smov 8  }
  0x8b   : > { %470 = dma.vmem_to_hbm [thread:$0]  (%p996_p5), %s927_s9, 1664, %s925_s16, %s307_s20, %s695_s23, %s695_s23, %s696_s26  }
  0x8c PF: > { %p492_p1 = scmp.ge.s32.totalorder %s687_s15, 2  ;;  %s335_s30 = sand.u32 1, %s675_s12  }
  0x8d   : > { %p997_p2 = scmp.ne.s32.totalorder %s987_s25, 0  ;;  %s336_s10 = scalar_lea.sflag [#allocation4], %s335_s30 }
  0x8f   : > { %p484_p8 = pnand %p492_p1, %p997_p2 }
  0x91   : > { %670 = dma.done.wait (!%p484_p8), %s336_s10, 1664  }
  0x92   : > { %672 = vsyncadd (!%p484_p8), %s336_s10, 4294965632  ;;  %p17_p6 = scmp.ge.s32.totalorder %s742_s18, 10   ;;  %s998_s12 = smov %s679_s13 }
  0x93   : > { %s999_s13 = smov %s683_s14  ;;  %s1000_s14 = smov %s754_s21 }
  0x94   : > { %s1001_s15 = smov %s742_s18  ;;  %19 = sbr.rel (!%p17_p6) target bundleno = 6 (0x6), region = 85 }
  0x9b   :  { %341 = vsyncpa [#allocation3], 1 }
  0x9c   :  { %343 = vsyncpa [#allocation3 + $0x1], 1 }
  0x9d   :  { %344 = vsyncpa [#allocation6], 1 }
  0x9e   :  { %345 = vsyncpa [#allocation4], 1 }
  0x9f   :  { %347 = vsyncpa [#allocation4 + $0x1], 1 }

// kernel: conv_block_pallas.2
= control target key start
LH: loop header
LB: loop body
LE: loop exit
PB: predicated region body
PF: predicated region fallthrough
CT: control target
= control target key end

     0   :  { %s4128_s0 = inlined_call_operand.hbm [shape: bf16[8,184,4], index: 0, kind: input, shape index: {}]   ;;  %s4129_s1 = inlined_call_operand.hbm [shape: bf16[9,4,128], index: 1, kind: input, shape index: {}]   ;;  %s4130_s2 = inlined_call_operand.hbm [shape: f32[4,100,1], index: 2, kind: input, shape index: {}]   ;;  %s4131_s3 = inlined_call_operand.hbm [shape: bf16[8,100,128], index: 3, kind: output, shape index: {0}]   ;;  %s4132_s4 = inlined_call_operand.hbm [shape: f32[8,1,128], index: 4, kind: output, shape index: {1}]   ;;  %s4133_s5 = inlined_call_operand.hbm [shape: f32[8,1,128], index: 5, kind: output, shape index: {2}]  }
   0x1   :  { %4144 = sst [smem:[#allocation20_spill]] %s4128_s0 }
   0x2   :  { %11 = vsyncpa [#allocation3], 0 }
   0x3   :  { %13 = vsyncpa [#allocation3 + $0x1], 0 }
   0x4   :  { %14 = vsyncpa [#allocation6], 0 }
   0x5   :  { %15 = vsyncpa [#allocation4], 0 }
   0x6   :  { %17 = vsyncpa [#allocation4 + $0x1], 0 }
   0x7   :  { %18 = vsyncpa [#allocation10], 0 }
   0x8   :  { %20 = vsyncpa [#allocation10 + $0x1], 0  ;;  %s3336_s18 = smov 0   ;;  %s3338_s19 = smov 0  }
   0x9   :  { %s3340_s20 = smov 0   ;;  %s3342_s21 = smov 0  }
   0xa   :  { %s3344_s22 = smov 0   ;;  %s3346_s23 = smov 0  }
   0xb   :  { %s3348_s24 = smov 0  }
   0xc LB: > { %4145 = sst [smem:[#allocation17_spill]] %s3283_s23  ;;  %s3372_s25 = sadd.s32 1, %s3287_s24   ;;  %s3287_s24 = sphi %s3348_s24, %s4177_s24   ;;  %s3283_s23 = sphi %s3346_s23, %s4171_s23   ;;  %s3279_s22 = sphi %s3344_s22, %s4176_s22   ;;  %s3275_s21 = sphi %s3342_s21, %s4175_s21   ;;  %s3271_s20 = sphi %s3340_s20, %s4174_s20   ;;  %s3267_s19 = sphi %s3338_s19, %s4173_s19   ;;  %s3263_s18 = sphi %s3336_s18, %s4172_s18  }
   0xd   : > { %s33_s26 = sadd.s32 1, %s3283_s23  ;;  %s30_s27 = ssub.s32 %s3287_s24, %s3372_s25 }
   0xe   : > { %p40_p0 = scmp.ne.s32.totalorder %s3283_s23, %s3279_s22  ;;  %p31_p1 = scmp.eq.s32.totalorder %s30_s27, 0 }
   0xf   : > { %p4135_p2 = scmp.eq.s32.totalorder %s3287_s24, 0  ;;  %p4134_p3 = scmp.lt.s32.totalorder %s3287_s24, 8 }
  0x10   : > { %s3382_s28 = scalar_select %p31_p1, %s3283_s23, %s33_s26  }
  0x11   : > { %p42_p4 = por %p4135_p2, %p40_p0  ;;  %s232_s29 = sand.u32 1, %s3287_s24  }
  0x12   : > { %4146 = sst [smem:[#allocation18_spill]] %s3382_s28  ;;  %s234_s30 = sand.u32 1, %s3283_s23  }
  0x13   : > { %s2891_s6 = smul.u32 92, %s234_s30  ;;  %p3393_p5 = pnand %p4134_p3, %p42_p4 }
  0x14   : > { %s2892_s8 = smul.u32 1472, %s3287_s24  ;;  %s4148_s0 = sld [smem:[#allocation20_spill]] }
  0x15   : > { %s236_s12 = scalar_lea.vmem [#allocation2], %s2891_s6  ;;  %s3405_s14 = scalar_lea.sflag [#allocation3], %s232_s29 }
  0x16   : > { %s243_s13 = sshll.u32 %s236_s12, 4  ;;  %p3043_p7 = pneg %p3393_p5  ;;  %s3403_s13 = int_to_ptr.vmem [resolvable:$true] %s243_s13 }
  0x1a   : > { %s3401_s11 = scalar_lea.hbm %s4148_s0, %s2892_s8  ;;  %s3046_s26 = scalar_lea.hbm %s4148_s0, 11776 }
  0x1b   : > { %s3041_s15 = scalar_lea.hbm %s3401_s11, 1472  ;;  %p3047_p10 = scmp.lt.u32.totalorder %s3401_s11, %s4148_s0 }
  0x1c   : > { %p3042_p6 = scmp.ne.s32.totalorder %s3401_s11, %s3041_s15  ;;  %p3048_p11 = scmp.lt.u32.totalorder %s3046_s26, %s3041_s15 }
  0x1d   : > { %p3050_p13 = scmp.lt.u32.totalorder %s3041_s15, %s3401_s11 }
  0x1e   : > { %p3044_p8 = pnand %p3043_p7, %p3042_p6  ;;  %p3049_p12 = por %p3048_p11, %p3047_p10 }
  0x20   : > { %p3045_p9 = pneg %p3044_p8  ;;  %p3051_p1 = por %p3050_p13, %p3049_p12 }
  0x22   : > { %p3052_p4 = pnand %p3051_p1, %p3045_p9 }
  0x24   : > { %3055 = shalt.err (!%p3052_p4)
}
  0x25   : > { %s3056_s29 = scalar_lea.vmem %s3403_s13, 1472  ;;  %s3289_s6 = smov [#allocation2]  }
  0x26   : > { %p3057_p6 = scmp.ne.s32.totalorder %s3403_s13, %s3056_s29  ;;  %s3061_s8 = sshll.u32 %s3289_s6, 4  ;;  %s3062_s8 = int_to_ptr.vmem [resolvable:$false] %s3061_s8 }
  0x27   : > { %s3063_s9 = scalar_lea.vmem %s3062_s8, 2944  ;;  %p3064_p2 = scmp.lt.s32.totalorder %s3403_s13, %s3062_s8 }
  0x28   : > { %p3059_p8 = pnand %p3057_p6, %p3043_p7  ;;  %p3065_p10 = scmp.lt.s32.totalorder %s3063_s9, %s3056_s29 }
  0x2a   : > { %p3060_p3 = pneg %p3059_p8  ;;  %p3066_p11 = por %p3065_p10, %p3064_p2 }
  0x2c   : > { %p3067_p12 = pnand %p3066_p11, %p3060_p3 }
  0x2e   : > { %3070 = shalt.err (!%p3067_p12)
}
  0x2f   : > { %s3290_s10 = smov 64   ;;  %s3291_s12 = smov 4  }
  0x30   : > { %2920 = dma.hbm_to_vmem [thread:$0]  (!%p3393_p5), %s3401_s11, 1472, %s3403_s13, %s3405_s14, %s3290_s10, %s3290_s10, %s3291_s12  }
  0x31   : > { %s3434_s15 = sadd.s32 4294967295, %s3287_s24   ;;  %s4136_s16 = sadd.s32 4294967294, %s3287_s24  }
  0x32   : > { %p46_p2 = scmp.ne.s32.totalorder %s3279_s22, %s3275_s21  ;;  %p4137_p3 = scmp.eq.s32.totalorder %s3434_s15, 0 }
  0x33   : > { %p117_p7 = scmp.ne.s32.totalorder %s3267_s19, %s3263_s18  ;;  %p141_p9 = scmp.eq.s32.totalorder %s3434_s15, 7 }
  0x34   : > { %p3445_p13 = por %p4137_p3, %p46_p2  ;;  %p147_p5 = scmp.eq.s32.totalorder %s4136_s16, 7 }
  0x35   : > { %p3453_p1 = por %p117_p7, %p4137_p3  ;;  %p3460_p4 = por %p141_p9, %p40_p0 }
  0x36   : > { %s4149_s17 = scalar_select %p3445_p13, 1, 0 }
  0x37   : > { %s4150_s7 = scalar_select %p3453_p1, 1, 0 }
  0x38   : > { %s4151_s11 = scalar_select %p3460_p4, 1, 0 }
  0x39   : > { %p3464_p6 = por %p147_p5, %p46_p2  ;;  %p2166_p8 = scmp.ge.s32.totalorder %s3287_s24, 1 }
  0x3a   : > { %p206_p10 = scmp.lt.s32.totalorder %s3287_s24, 9  ;;  %s3292_s26 = smov [#allocation5]  }
  0x3b   : > { %s4152_s18 = scalar_select %p3464_p6, 1, 0 }
  0x3c   : > { %p3470_p11 = pnand %p2166_p8, %p206_p10  ;;  %s218_s27 = sshll.u32 %s3292_s26, 4  ;;  %s3474_s27 = int_to_ptr.vmem [resolvable:$true] %s218_s27 }
  0x3d   : > { %4153 = sst [smem:[#allocation19_spill]] %s4152_s18  ;;  %s78_s29 = ssub.s32 0, %s3287_s24 }
  0x3e   : > { %s4154_s13 = scalar_select %p3470_p11, 1, 0 }
  0x3f   : > { %p2913_p0 = pneg %p3470_p11  ;;  %s2160_s6 = smin.u32 %s3287_s24, %s78_s29 }
  0x40   : > { %s80_s8 = sand.u32 3, %s2160_s6   ;;  %s3071_s12 = scalar_lea.hbm %s4129_s1, 288 }
  0x41   : > { %p3481_p7 = pnand %p2913_p0, %p4137_p3  ;;  %p3072_p9 = scmp.ne.s32.totalorder %s4129_s1, %s3071_s12 }
  0x42   : > { %p3078_p0 = scmp.lt.u32.totalorder %s3071_s12, %s4129_s1 }
  0x43   : > { %p3073_p5 = pneg %p3481_p7 }
  0x45   : > { %p3074_p8 = pnand %p3073_p5, %p3072_p9 }
  0x47   : > { %p3075_p10 = pneg %p3074_p8 }
  0x49   : > { %p3080_p3 = pnand %p3078_p0, %p3075_p10 }
  0x4b   : > { %3083 = shalt.err (!%p3080_p3)
}
  0x4c   : > { %s3084_s29 = scalar_lea.vmem %s3474_s27, 288  ;;  %p3092_p4 = scmp.lt.s32.totalorder %s3474_s27, %s3474_s27 }
  0x4d   : > { %p3085_p2 = scmp.ne.s32.totalorder %s3474_s27, %s3084_s29  ;;  %p3093_p1 = scmp.lt.s32.totalorder %s3084_s29, %s3084_s29 }
  0x4f   : > { %p3087_p12 = pnand %p3085_p2, %p3073_p5  ;;  %p3094_p13 = por %p3093_p1, %p3092_p4 }
  0x51   : > { %p3088_p6 = pneg %p3087_p12 }
  0x53   : > { %p3095_p11 = pnand %p3094_p13, %p3088_p6 }
  0x55   : > { %3098 = shalt.err (!%p3095_p11)
}
  0x56   : > { %s3293_s16 = smov 32   ;;  %s3294_s0 = smov 2  }
  0x57   : > { %2916 = dma.hbm_to_vmem [thread:$0]  (!%p3481_p7), %s4129_s1, 288, %s3474_s27, [#allocation6], %s3293_s16, %s3293_s16, %s3294_s0  }
  0x58   : > { %s81_s9 = ssub.s32 0, %s80_s8  ;;  %s90_s10 = ssub.s32 0, %s3372_s25 }
  0x59   : > { %p4156_p3 = scmp.lt.s32.totalorder %s3287_s24, 0  ;;  %s2163_s12 = smin.u32 %s90_s10, %s3372_s25 }
  0x5a   : > { %s104_s26 = sadd.s32 1, %s3271_s20  ;;  %s92_s23 = sand.u32 3, %s2163_s12  }
  0x5b   : > { %s4179_s9 = smov (!%p4156_p3, %s81_s9), %s80_s8  ;;  %p111_p1 = scmp.ne.s32.totalorder %s3271_s20, %s3267_s19 }
  0x5c   : > { %p2162_p13 = scmp.lt.s32.totalorder %s4179_s9, 0  ;;  %s87_s29 = sadd.s32 4, %s4179_s9 }
  0x5d   : > { %s93_s18 = ssub.s32 0, %s92_s23  ;;  %p4157_p4 = scmp.eq.s32.totalorder %s3287_s24, 0 }
  0x5e   : > { %s4181_s29 = smov (!%p2162_p13, %s87_s29), %s4179_s9  ;;  %p4158_p11 = scmp.lt.s32.totalorder %s3372_s25, 0 }
  0x5f   : > { %p113_p6 = por %p111_p1, %p4157_p4  ;;  %s255_s30 = sand.u32 1, %s3271_s20  }
  0x60   : > { %s4183_s18 = smov (!%p4158_p11, %s93_s18), %s92_s23  ;;  %s2894_s27 = smul.u32 1664, %s4181_s29 }
  0x61   : > { %p2165_p12 = scmp.lt.s32.totalorder %s4183_s18, 0  ;;  %s99_s16 = sadd.s32 4, %s4183_s18 }
  0x62   : > { %s2893_s0 = smul.u32 104, %s255_s30  ;;  %s3524_s6 = scalar_lea.hbm %s4130_s2, %s2894_s27 }
  0x63   : > { %s4185_s16 = smov (!%p2165_p12, %s99_s16), %s4183_s18  ;;  %p4159_p7 = scmp.lt.s32.totalorder %s3287_s24, 8 }
  0x64   : > { %s101_s23 = ssub.s32 %s4181_s29, %s4185_s16  ;;  %s257_s10 = scalar_lea.vmem [#allocation7], %s2893_s0 }
  0x65   : > { %p3528_p2 = pnand %p4159_p7, %p113_p6  ;;  %s276_s12 = sshll.u32 %s257_s10, 4  ;;  %s3532_s12 = int_to_ptr.vmem [resolvable:$true] %s276_s12 }
  0x66   : > { %p102_p9 = scmp.eq.s32.totalorder %s101_s23, 0  ;;  %s3099_s27 = scalar_lea.hbm %s3524_s6, 1664 }
  0x67   : > { %p3100_p5 = scmp.ne.s32.totalorder %s3524_s6, %s3099_s27  ;;  %p3101_p8 = pneg %p3528_p2 }
  0x68   : > { %s3535_s30 = scalar_select %p102_p9, %s3271_s20, %s104_s26  }
  0x69   : > { %p3102_p10 = pnand %p3101_p8, %p3100_p5  ;;  %s3104_s28 = scalar_lea.hbm %s4130_s2, 6656 }
  0x6a   : > { %p3105_p3 = scmp.lt.u32.totalorder %s3524_s6, %s4130_s2  ;;  %p3106_p13 = scmp.lt.u32.totalorder %s3104_s28, %s3099_s27 }
  0x6b   : > { %p3103_p0 = pneg %p3102_p10  ;;  %p3108_p4 = scmp.lt.u32.totalorder %s3099_s27, %s3524_s6 }
  0x6c   : > { %p3107_p1 = por %p3106_p13, %p3105_p3 }
  0x6e   : > { %p3109_p6 = por %p3108_p4, %p3107_p1 }
  0x70   : > { %p3110_p11 = pnand %p3109_p6, %p3103_p0 }
  0x72   : > { %3113 = shalt.err (!%p3110_p11)
}
  0x73   : > { %s3114_s26 = scalar_lea.vmem %s3532_s12, 1664  ;;  %s3295_s0 = smov [#allocation7]  }
  0x74   : > { %p3115_p12 = scmp.ne.s32.totalorder %s3532_s12, %s3114_s26  ;;  %s3119_s23 = sshll.u32 %s3295_s0, 4  ;;  %s3120_s23 = int_to_ptr.vmem [resolvable:$false] %s3119_s23 }
  0x75   : > { %s3121_s10 = scalar_lea.vmem %s3120_s23, 3328  ;;  %p3122_p5 = scmp.lt.s32.totalorder %s3532_s12, %s3120_s23 }
  0x76   : > { %p3117_p7 = pnand %p3115_p12, %p3101_p8  ;;  %p3123_p10 = scmp.lt.s32.totalorder %s3121_s10, %s3114_s26 }
  0x78   : > { %p3118_p9 = pneg %p3117_p7  ;;  %p3124_p3 = por %p3123_p10, %p3122_p5 }
  0x7a   : > { %p3125_p13 = pnand %p3124_p3, %p3118_p9 }
  0x7c   : > { %3128 = shalt.err (!%p3125_p13)
}
  0x7d   : > { %s3296_s27 = smov 128   ;;  %s3297_s18 = smov 8  }
  0x7e   : > { %2923 = dma.hbm_to_vmem [thread:$0]  (!%p3528_p2), %s3524_s6, 1664, %s3532_s12, %s3405_s14, %s3296_s27, %s3296_s27, %s3297_s18  }
  0x7f   : > { %p4161_p8 = scmp.ne.s32.totalorder %s4154_s13, 0 }
  0x80   : > { %s290_s8 = sand.u32 (!%p4161_p8), 1, %s3434_s15   ;;  %s3567_s28 = sand.u32 (!%p4161_p8), 1, %s3279_s22  }
  0x81   : > { %288 = sbr.rel (%p4161_p8) target bundleno = 687 (0x2af), region = 32  ;;  %s291_s16 = scalar_lea.sflag (!%p4161_p8), [#allocation3], %s290_s8 }
  0x82   : > { %s2895_s29 = smul.u32 (!%p4161_p8), 92, %s3567_s28  ;;  %p4162_p0 = scmp.ne.s32.totalorder (!%p4161_p8), %s4149_s17, 0 }
  0x84   : > { %s3572_s26 = scalar_lea.vmem (!%p4161_p8), [#allocation2], %s2895_s29 }
  0x88   : > { %3242 = dma.done.wait (%p4162_p0), %s291_s16, 1472  }
  0x89   : > { %3244 = vsyncadd (%p4162_p0), %s291_s16, 4294965824  ;;  %p4163_p2 = scmp.eq.s32.totalorder %s3434_s15, 0 }
  0x8b   : > { %3246 = dma.done.wait (%p4163_p2), [#allocation6], 288   ;;  %p4164_p1 = pmov %p4163_p2 }
  0x8c   : > { %s305_s14 = sand.u32 1, %s3267_s19   ;;  %p4165_p4 = scmp.ne.s32.totalorder %s4150_s7, 0 }
  0x8d   : > { %3248 = vsyncadd (%p4164_p1), [#allocation6], 4294967008  ;;  %s2896_s13 = smul.u32 104, %s305_s14 }
  0x8f   : > { %s3583_s6 = scalar_lea.vmem [#allocation7], %s2896_s13 }
  0x90   : > { %3250 = dma.done.wait (%p4165_p4), %s291_s16, 1664  }
  0x91   : > { %3252 = vsyncadd (%p4165_p4), %s291_s16, 4294965632  ;;  %v3298_v0 = vmov 0.0   ;;  %vm3299_vm0 = vmmov 0   ;;  %vm447_vm1 = vcmask 1041408   ;;  %v982_v1 = vld [vmem:[#allocation5 + $0x8] sm:$0x3] }
  0x92   : > { %2530 = vmatprep.subr.bf16.mxu0 %v3298_v0  ;;  %2410 = vmatprep.subr.bf16.mxu1 %v3298_v0  ;;  %v377_v2 = vld [vmem:[#allocation5 + $0x2] sm:$0x3]  ;;  %v3596_v3 = vsel %vm447_vm1, %v982_v1, 0  ;;  %v3600_v5 = vld [vmem:[%s3572_s26 + $0x4] sm:$0xf]  ;;  %v3605_v7 = vld [vmem:[%s3572_s26 + $0x8] sm:$0xff]  }
  0x93   : > { %2412 = vmatprep.mubr.msk.bf16.mxu1 %vm3299_vm0, %v3298_v0  ;;  %2532 = vmatprep.mubr.msk.bf16.mxu0 %vm3299_vm0, %v3298_v0  ;;  %v449_v4 = vsel %vm447_vm1, %v377_v2, 0  ;;  %v374_v6 = vld [vmem:[%s3572_s26] sm:$0xe]  ;;  %vm411_vm2 = vcmask 1046528   ;;  %v3610_v9 = vld [vmem:[%s3572_s26 + $0x18] sm:$0xf] }
  0x94   : > { %2531 = vmatpush3.bf16.msra.mxu0 %v3596_v3  ;;  %2411 = vmatpush3.bf16.msra.mxu1 %v449_v4  ;;  %v2176_v8 = vcombine.low %v374_v6, %v3600_v5  ;;  %v413_v10 = vrot.slane %v3605_v7, 1  ;;  %v3615_v11 = vld [vmem:[%s3572_s26 + $0x1c] sm:$0xff]   ;;  %vm425_vm3 = vcmask 31744   ;;  %v979_v13 = vld [vmem:[%s3572_s26 + $0x14] sm:$0xe]  ;;  %v3625_v20 = vld [vmem:[%s3572_s26 + $0x24] sm:$0xff]  }
  0x95   : > { %2560 = vmatprep.subr.bf16.mxu0 %v3298_v0  ;;  %2440 = vmatprep.subr.bf16.mxu1 %v3298_v0  ;;  %v3619_v14 = vld [vmem:[%s3572_s26 + $0x10] sm:$0xff]   ;;  %v2222_v15 = vcombine.low %v979_v13, %v3610_v9  ;;  %v990_v16 = vrot.slane %v3615_v11, 1  ;;  %v1130_v17 = vld [vmem:[#allocation5 + $0xa] sm:$0x3]  ;;  %v373_v19 = vld [vmem:[#allocation5] sm:$0x3] }
  0x96   : > { %v412_v12 = vrot.slane %v2176_v8, 1  ;;  %v567_v22 = vsel %vm447_vm1, %v373_v19, 0  ;;  %v1172_v23 = vsel %vm447_vm1, %v1130_v17, 0  ;;  %v415_v24 = vrot.slane %v3619_v14, 1  ;;  %v3641_v28 = vld [vmem:[%s3572_s26 + $0x18] sm:$0xff]   ;;  %v3647_v30 = vld [vmem:[%s3572_s26 + $0x2c] sm:$0xff]  }
  0x97   : > { %v989_v21 = vrot.slane %v2222_v15, 1  ;;  %v992_v26 = vrot.slane %v3625_v20, 1  ;;  %v417_v31 = vrot.slane %v3641_v28, 1  ;;  %v994_v32 = vrot.slane %v3647_v30, 1  ;;  %v3658_v34 = vld [vmem:[%s3572_s26 + $0x20] sm:$0xff]   ;;  %v3663_v36 = vld [vmem:[%s3572_s26 + $0x34] sm:$0xff]  }
  0x98   : > { %v414_v18 = vsel %vm411_vm2, %v412_v12, %v413_v10  ;;  %v416_v27 = vsel %vm411_vm2, %v413_v10, %v415_v24  ;;  %v419_v37 = vrot.slane %v3658_v34, 1  ;;  %v1127_v38 = vld [vmem:[%s3572_s26 + $0x14] sm:$0xc]  ;;  %v996_v39 = vrot.slane %v3663_v36, 1  ;;  %v3675_v41 = vld [vmem:[%s3572_s26 + $0x28] sm:$0xff]   ;;  %v3724_v1 = vld [vmem:[%s3572_s26 + $0x3c] sm:$0xff]  }
  0x99   : > { %2413 = vmatmul.mubr.msk.bf16.vlgmr.msra.gmra.mrb[0].mxu1 %vm425_vm3, %v414_v18  ;;  %v991_v25 = vsel %vm411_vm2, %v989_v21, %v990_v16  ;;  %v993_v29 = vsel %vm411_vm2, %v990_v16, %v992_v26  ;;  %v418_v33 = vsel %vm411_vm2, %v415_v24, %v417_v31  ;;  %v995_v35 = vsel %vm411_vm2, %v992_v26, %v994_v32  ;;  %v3023_v48 = vld [vmem:[%s3572_s26 + $0x30] ss:$0 sps:$4 sm:$0x77]   ;;  %v1289_v49 = vld [vmem:[#allocation5 + $0xc] sm:$0x3]  ;;  %s2897_s17 = smul.u32 52, %s3567_s28 }
  0x9a   : > { %2416 = vmatprep.mubr.msk.bf16.mxu1 %vm3299_vm0, %v3298_v0  ;;  %2441 = vmatpush3.bf16.msra.mxu1 %v567_v22  ;;  %v420_v40 = vsel %vm411_vm2, %v417_v31, %v419_v37  ;;  %v2231_v42 = vcombine.low %v1127_v38, %v3610_v9  ;;  %v997_v43 = vsel %vm411_vm2, %v994_v32, %v996_v39  ;;  %v421_v44 = vrot.slane %v3675_v41, 1  ;;  %v360_v58 = vld [vmem:[%s3572_s26] sm:$0xf]  ;;  %v3025_v6 = vld [vmem:[%s3572_s26 + $0x44] ss:$0 sps:$4 sm:$0xff]   ;;  %v3772_v18 = vld [vmem:[%s3572_s26 + $0x30] sm:$0xff]  }
  0x9b   : > { %2470 = vmatprep.subr.bf16.mxu1 %v3298_v0  ;;  %2533 = vmatmul.mubr.msk.bf16.vlgmr.msra.gmra.mrb[0].mxu0 %vm425_vm3, %v991_v25  ;;  %v1138_v46 = vrot.slane %v3615_v11, 2  ;;  %vm667_vm4 = vcmask 1045504   ;;  %v1345_v51 = vsel %vm447_vm1, %v1289_v49, 0  ;;  %v423_v52 = vrot.slane %v3023_v48, 1  ;;  %v660_v59 = vld [vmem:[#allocation5 + $0x4] sm:$0x3] }
  0x9c   : > { %2561 = vmatpush3.bf16.msra.mxu0 %v1172_v23  ;;  %2536 = vmatprep.mubr.msk.bf16.mxu0 %vm3299_vm0, %v3298_v0  ;;  %v1137_v45 = vrot.slane %v2231_v42, 2  ;;  %v422_v47 = vsel %vm411_vm2, %v419_v37, %v421_v44  ;;  %v1140_v53 = vrot.slane %v3625_v20, 2  ;;  %v1142_v56 = vrot.slane %v3647_v30, 2  ;;  %v1275_v12 = vld [vmem:[%s3572_s26 + $0x28] sm:$0xf]  ;;  %v3786_v23 = vld [vmem:[%s3572_s26 + $0x38] sm:$0xff]  }
  0x9d   : > { %2590 = vmatprep.subr.bf16.mxu0 %v3298_v0  ;;  %v424_v54 = vsel %vm411_vm2, %v421_v44, %v423_v52  ;;  %v2190_v60 = vcombine.low %v360_v58, %v3600_v5  ;;  %v1144_v61 = vrot.slane %v3663_v36, 2  ;;  %v703_v62 = vsel %vm447_vm1, %v660_v59, 0  ;;  %v3759_v13 = vld [vmem:[%s3572_s26 + $0x2c] sm:$0xf]  ;;  %v1451_v15 = vld [vmem:[#allocation5 + $0xe] sm:$0x3] }
  0x9e   : > { %v1139_v50 = vsel %vm667_vm4, %v1137_v45, %v1138_v46  ;;  %v1141_v55 = vsel %vm667_vm4, %v1138_v46, %v1140_v53  ;;  %v1143_v57 = vsel %vm667_vm4, %v1140_v53, %v1142_v56  ;;  %v1146_v2 = vrot.slane %v3724_v1, 2  ;;  %v657_v19 = vld [vmem:[%s3572_s26] sm:$0xc]  ;;  %v3028_v21 = vld [vmem:[%s3572_s26 + $0x30] ss:$0 sps:$4 sm:$0x33]  }
  0x9f   : > { %v1145_v63 = vsel %vm667_vm4, %v1142_v56, %v1144_v61  ;;  %v1148_v8 = vrot.slane %v3025_v6, 2  ;;  %v2240_v16 = vcombine.low %v1275_v12, %v3759_v13  ;;  %v1493_v17 = vsel %vm447_vm1, %v1451_v15, 0  ;;  %v820_v26 = vld [vmem:[#allocation5 + $0x6] sm:$0x3]  ;;  %v3812_v32 = vld [vmem:[%s3572_s26 + $0x48] sm:$0xff]   ;;  %s3985_s7 = scalar_lea.vmem [#allocation8], %s2897_s17 }
  0xa0   : > { %v1147_v4 = vsel %vm667_vm4, %v1144_v61, %v1146_v2  ;;  %v2199_v22 = vcombine.low %v657_v19, %v3600_v5  ;;  %v669_v25 = vrot.slane %v3605_v7, 2  ;;  %v3300_v37 = vmov 0   ;;  %v1813_v42 = vld [vmem:[%s3583_s6 + $0x18] sm:$0xff]  ;;  %v1814_v44 = vld [vmem:[%s3583_s6 + $0x20] sm:$0xff]  ;;  %v1815_v45 = vld [vmem:[%s3583_s6 + $0x28] sm:$0xff]  ;;  %s1977_s9 = sshll.u32 %s3985_s7, 4  ;;  %s3997_s9 = int_to_ptr.vmem [resolvable:$true] %s1977_s9 }
  0xa1   : > { %2417 = vmatmul.mubr.msk.bf16.gmra.mrb[4].mxu1 %vm425_vm3, %v416_v27  ;;  %v1149_v10 = vsel %vm667_vm4, %v1146_v2, %v1148_v8  ;;  %v876_v27 = vsel %vm447_vm1, %v820_v26, 0  ;;  %3006 = vset.pattern.permute.xlu0 %v3300_v37  ;;  %v1816_v48 = vld [vmem:[%s3583_s6 + $0x30] sm:$0xff]  ;;  %v1817_v49 = vld [vmem:[%s3583_s6 + $0x38] sm:$0xff]  ;;  %v1819_v53 = vld [vmem:[%s3583_s6 + $0x48] sm:$0xff]  ;;  %v1461_v2 = vrot.slane %v3786_v23, 1  ;;  %s2898_s12 = smul.u32 832, %s3434_s15 }
  0xa2   : > { %2420 = vmatprep.mubr.msk.bf16.mxu1 %vm3299_vm0, %v3298_v0  ;;  %v668_v24 = vrot.slane %v2199_v22, 2  ;;  %3007 = vset.pattern.permute.xlu1 %v3300_v37  ;;  %v1599_v58 = vld [vmem:[#allocation5 + $0x10] sm:$0x3]  ;;  %v806_v12 = vld [vmem:[%s3572_s26 + $0x14] sm:$0xf]  ;;  %vm1912_vm5 = vcmask 1043456  }
  0xa3   : > { %2537 = vmatmul.mubr.msk.bf16.gmra.mrb[4].mxu0 %vm425_vm3, %v993_v29  ;;  %v3799_v29 = vld [vmem:[%s3572_s26 + $0x40] sm:$0xff]   ;;  %v1641_v61 = vsel %vm447_vm1, %v1599_v58, 0  ;;  %v2208_v15 = vcombine.low %v806_v12, %v3610_v9  ;;  %s4002_s10 = scalar_lea.hbm %s4131_s3, %s2898_s12  ;;  %s1956_s27 = scalar_lea.sflag [#allocation4], %s3567_s28 }
  0xa4   : > { %2540 = vmatprep.mubr.msk.bf16.mxu0 %vm3299_vm0, %v3298_v0  ;;  %v670_v5 = vsel %vm667_vm4, %v668_v24, %v669_v25  ;;  %v1820_v59 = vld [vmem:[%s3583_s6 + $0x50] sm:$0xff]  ;;  %s3129_s18 = scalar_lea.vmem %s3997_s9, 832  ;;  %p4166_p11 = scmp.ne.s32.totalorder %s4151_s11, 0 }
  0xa5   : > { %p3130_p6 = scmp.ne.s32.totalorder %s3997_s9, %s3129_s18  ;;  %s3301_s29 = smov [#allocation8]  }
  0xa6   : > { %s3133_s16 = sshll.u32 %s3301_s29, 4  ;;  %s3134_s16 = int_to_ptr.vmem [resolvable:$false] %s3133_s16 }
  0xa7   : > { %p3131_p12 = pnand %p3130_p6, %p4166_p11  ;;  %p3136_p9 = scmp.lt.s32.totalorder %s3997_s9, %s3134_s16 }
  0xa9   : > { %2421 = vmatmul.mubr.msk.bf16.gmra.mrb[8].mxu1 %vm425_vm3, %v418_v33  ;;  %v1810_v33 = vld [vmem:[%s3583_s6] sm:$0xff]  ;;  %p3132_p7 = pneg %p3131_p12 }
  0xaa   : > { %2424 = vmatprep.mubr.msk.bf16.mxu1 %vm3299_vm0, %v3298_v0  ;;  %1825 = vperm.xlu0 %3006, %v1810_v33   ;;  %v3040_v33 = vld [vmem:[%s3572_s26 + $0x58] ss:$0 sps:$4 sm:$0xff]  }
  0xab   : > { %2541 = vmatmul.mubr.msk.bf16.gmra.mrb[8].mxu0 %vm425_vm3, %v995_v35  ;;  %v1812_v35 = vld [vmem:[%s3583_s6 + $0x10] sm:$0xff] }
  0xac   : > { %2544 = vmatprep.mubr.msk.bf16.mxu0 %vm3299_vm0, %v3298_v0  ;;  %1835 = vperm.xlu1 %3007, %v1812_v35   ;;  %v1617_v35 = vrot.slane %v3040_v33, 2 }
  0xb0   : > { %1840 = vperm.xlu1 %3007, %v1813_v42  }
  0xb1   : > { %2425 = vmatmul.mubr.msk.bf16.gmra.mrb[12].mxu1 %vm425_vm3, %v420_v40  ;;  %v1811_v40 = vld [vmem:[%s3583_s6 + $0x8] sm:$0xff] }
  0xb2   : > { %2428 = vmatprep.mubr.msk.bf16.mxu1 %vm3299_vm0, %v3298_v0  ;;  %1830 = vperm.xlu0 %3006, %v1811_v40  }
  0xb3   : > { %2545 = vmatmul.mubr.msk.bf16.gmra.mrb[12].mxu0 %vm425_vm3, %v997_v43  ;;  %v675_v43 = vrot.slane %v3658_v34, 2 }
  0xb4   : > { %2562 = vmatprep.mubr.msk.bf16.mxu0 %vm3299_vm0, %v3298_v0  ;;  %1850 = vperm.xlu1 %3007, %v1815_v45  }
  0xb6   : > { %1845 = vperm.xlu0 %3006, %v1814_v44  }
  0xb8   : > { %1860 = vperm.xlu1 %3007, %v1817_v49  }
  0xb9   : > { %2429 = vmatmul.mubr.msk.bf16.gmra.mrb[16].mxu1 %vm425_vm3, %v422_v47  ;;  %v1448_v47 = vld [vmem:[%s3572_s26 + $0x28] sm:$0xe] }
  0xba   : > { %2432 = vmatprep.mubr.msk.bf16.mxu1 %vm3299_vm0, %v3298_v0  ;;  %1855 = vperm.xlu0 %3006, %v1816_v48  }
  0xbb   : > { %2563 = vmatmul.mubr.msk.bf16.vlgmr.msra.gmra.mrb[0].mxu0 %vm425_vm3, %v1139_v50  ;;  %v2254_v50 = vcombine.low %v1448_v47, %v3759_v13 }
  0xbc   : > { %2591 = vmatpush3.bf16.msra.mxu0 %v1345_v51  ;;  %2566 = vmatprep.mubr.msk.bf16.mxu0 %vm3299_vm0, %v3298_v0  ;;  %v677_v51 = vrot.slane %v3675_v41, 2 }
  0xbd   : > { %2620 = vmatprep.subr.bf16.mxu0 %v3298_v0  ;;  %1870 = vperm.xlu1 %3007, %v1819_v53  }
  0xbe   : > { %v678_v56 = vsel %vm667_vm4, %v675_v43, %v677_v51 }
  0xc1   : > { %2433 = vmatmul.mubr.msk.bf16.gmra.mrb[20].mxu1 %vm425_vm3, %v424_v54  ;;  %v1459_v54 = vrot.slane %v3772_v18, 1 }
  0xc2   : > { %2436 = vmatprep.mubr.msk.bf16.mxu1 %vm3299_vm0, %v3298_v0 }
  0xc3   : > { %2567 = vmatmul.mubr.msk.bf16.gmra.mrb[4].mxu0 %vm425_vm3, %v1141_v55  ;;  %v1458_v55 = vrot.slane %v2254_v50, 1  ;;  %v1462_v6 = vsel %vm411_vm2, %v1459_v54, %v1461_v2 }
  0xc4   : > { %2570 = vmatprep.mubr.msk.bf16.mxu0 %vm3299_vm0, %v3298_v0 }
  0xc9   : > { %2437 = vmatmul.mubr.msk.bf16.gmra.mrb[24].mxu1 %vm425_vm3, %v423_v52  ;;  %v1818_v52 = vld [vmem:[%s3583_s6 + $0x40] sm:$0xff] }
  0xca   : > { %2442 = vmatprep.mubr.msk.bf16.mxu1 %vm3299_vm0, %v3298_v0  ;;  %1865 = vperm.xlu0 %3006, %v1818_v52  }
  0xcb   : > { %2571 = vmatmul.mubr.msk.bf16.gmra.mrb[8].mxu0 %vm425_vm3, %v1143_v57  ;;  %v3035_v57 = vld [vmem:[%s3572_s26 + $0x30] ss:$0 sps:$4 sm:$0xff]  }
  0xcc   : > { %2574 = vmatprep.mubr.msk.bf16.mxu0 %vm3299_vm0, %v3298_v0 }
  0xce   : > { %1875 = vperm.xlu0 %3006, %v1820_v59  }
  0xd1   : > { %2443 = vmatmul.mubr.msk.bf16.vlgmr.msra.gmra.mrb[0].mxu1 %vm425_vm3, %v2190_v60  ;;  %v1460_v60 = vsel %vm411_vm2, %v1458_v55, %v1459_v54 }
  0xd2   : > { %2446 = vmatprep.mubr.msk.bf16.mxu1 %vm3299_vm0, %v3298_v0  ;;  %2471 = vmatpush3.bf16.msra.mxu1 %v703_v62  ;;  %v679_v62 = vrot.slane %v3035_v57, 2 }
  0xd3   : > { %2500 = vmatprep.subr.bf16.mxu1 %v3298_v0  ;;  %2575 = vmatmul.mubr.msk.bf16.gmra.mrb[12].mxu0 %vm425_vm3, %v1145_v63  ;;  %v1822_v63 = vld [vmem:[%s3583_s6 + $0x60] sm:$0xf] }
  0xd4   : > { %2578 = vmatprep.mubr.msk.bf16.mxu0 %vm3299_vm0, %v3298_v0  ;;  %1885 = vperm.xlu0 %3006, %v1822_v63  }
  0xd9   : > { %2447 = vmatmul.mubr.msk.bf16.gmra.mrb[4].mxu1 %vm425_vm3, %v3605_v7  ;;  %v671_v7 = vrot.slane %v3619_v14, 2 }
  0xda   : > { %2450 = vmatprep.mubr.msk.bf16.mxu1 %vm3299_vm0, %v3298_v0 }
  0xdb   : > { %2579 = vmatmul.mubr.msk.bf16.gmra.mrb[16].mxu0 %vm425_vm3, %v1147_v4  ;;  %v672_v31 = vsel %vm667_vm4, %v669_v25, %v671_v7  ;;  %v680_v4 = vsel %vm667_vm4, %v677_v51, %v679_v62 }
  0xdc   : > { %2582 = vmatprep.mubr.msk.bf16.mxu0 %vm3299_vm0, %v3298_v0 }
  0xe1   : > { %2451 = vmatmul.mubr.msk.bf16.gmra.mrb[8].mxu1 %vm425_vm3, %v3619_v14  ;;  %v673_v14 = vrot.slane %v3641_v28, 2 }
  0xe2   : > { %2454 = vmatprep.mubr.msk.bf16.mxu1 %vm3299_vm0, %v3298_v0 }
  0xe3   : > { %2583 = vmatmul.mubr.msk.bf16.gmra.mrb[20].mxu0 %vm425_vm3, %v1149_v10  ;;  %v674_v38 = vsel %vm667_vm4, %v671_v7, %v673_v14  ;;  %v676_v46 = vsel %vm667_vm4, %v673_v14, %v675_v43  ;;  %v1613_v7 = vrot.slane %v3812_v32, 2 }
  0xe4   : > { %2586 = vmatprep.mubr.msk.bf16.mxu0 %vm3299_vm0, %v3298_v0 }
  0xe9   : > { %2455 = vmatmul.mubr.msk.bf16.gmra.mrb[12].mxu1 %vm425_vm3, %v3641_v28  ;;  %v3827_v28 = vld [vmem:[%s3572_s26 + $0x50] sm:$0xff]  }
  0xea   : > { %2458 = vmatprep.mubr.msk.bf16.mxu1 %vm3299_vm0, %v3298_v0  ;;  %v1467_v9 = vrot.slane %v3827_v28, 1 }
  0xeb   : > { %2587 = vmatmul.mubr.msk.bf16.gmra.mrb[24].mxu0 %vm425_vm3, %v1148_v8  ;;  %v1463_v8 = vrot.slane %v3799_v29, 1 }
  0xec   : > { %2592 = vmatprep.mubr.msk.bf16.mxu0 %vm3299_vm0, %v3298_v0 }
  0xed   : > { %v1464_v10 = vsel %vm411_vm2, %v1461_v2, %v1463_v8 }
  0xf1   : > { %2459 = vmatmul.mubr.msk.bf16.gmra.mrb[16].mxu1 %vm425_vm3, %v3658_v34  ;;  %v3033_v34 = vld [vmem:[%s3572_s26 + $0x58] ss:$0 sps:$4 sm:$0x33]  }
  0xf2   : > { %2462 = vmatprep.mubr.msk.bf16.mxu1 %vm3299_vm0, %v3298_v0 }
  0xf3   : > { %2593 = vmatmul.mubr.msk.bf16.vlgmr.msra.gmra.mrb[0].mxu0 %vm425_vm3, %v2240_v16  ;;  %v1465_v16 = vrot.slane %v3812_v32, 1 }
  0xf4   : > { %2621 = vmatpush3.bf16.msra.mxu0 %v1493_v17  ;;  %2596 = vmatprep.mubr.msk.bf16.mxu0 %vm3299_vm0, %v3298_v0 }
  0xf5   : > { %2650 = vmatprep.subr.bf16.mxu0 %v3298_v0  ;;  %v1466_v17 = vsel %vm411_vm2, %v1463_v8, %v1465_v16  ;;  %v1468_v19 = vsel %vm411_vm2, %v1465_v16, %v1467_v9 }
  0xf9   : > { %2463 = vmatmul.mubr.msk.bf16.gmra.mrb[20].mxu1 %vm425_vm3, %v3675_v41  ;;  %v1821_v41 = vld [vmem:[%s3583_s6 + $0x58] sm:$0xff] }
  0xfa   : > { %2466 = vmatprep.mubr.msk.bf16.mxu1 %vm3299_vm0, %v3298_v0  ;;  %1880 = vperm.xlu1 %3007, %v1821_v41  }
  0xfb   : > { %2597 = vmatmul.mubr.msk.bf16.gmra.mrb[4].mxu0 %vm425_vm3, %v3772_v18 }
  0xfc   : > { %2600 = vmatprep.mubr.msk.bf16.mxu0 %vm3299_vm0, %v3298_v0 }
 0x101   : > { %2467 = vmatmul.mubr.msk.bf16.gmra.mrb[24].mxu1 %vm425_vm3, %v3028_v21  ;;  %v3036_v21 = vld [vmem:[%s3572_s26 + $0x58] ss:$0 sps:$4 sm:$0x77]  }
 0x102   : > { %2472 = vmatprep.mubr.msk.bf16.mxu1 %vm3299_vm0, %v3298_v0 }
 0x103   : > { %2601 = vmatmul.mubr.msk.bf16.gmra.mrb[8].mxu0 %vm425_vm3, %v3786_v23 }
 0x104   : > { %2604 = vmatprep.mubr.msk.bf16.mxu0 %vm3299_vm0, %v3298_v0 }
 0x109   : > { %2473 = vmatmul.mubr.msk.bf16.vlgmr.msra.gmra.mrb[0].mxu1 %vm425_vm3, %v670_v5  ;;  %v1611_v5 = vrot.slane %v3799_v29, 2 }
 0x10a   : > { %2476 = vmatprep.mubr.msk.bf16.mxu1 %vm3299_vm0, %v3298_v0  ;;  %2501 = vmatpush3.bf16.msra.mxu1 %v876_v27  ;;  %v998_v27 = vrot.slane %v3724_v1, 1 }
 0x10b   : > { %2680 = vmatprep.subr.bf16.mxu1 %v3298_v0  ;;  %2605 = vmatmul.mubr.msk.bf16.gmra.mrb[12].mxu0 %vm425_vm3, %v3799_v29  ;;  %v1614_v14 = vsel %vm667_vm4, %v1611_v5, %v1613_v7 }
 0x10c   : > { %2608 = vmatprep.mubr.msk.bf16.mxu0 %vm3299_vm0, %v3298_v0  ;;  %v999_v29 = vsel %vm411_vm2, %v996_v39, %v998_v27 }
 0x111   : > { %2477 = vmatmul.mubr.msk.bf16.gmra.mrb[4].mxu1 %vm425_vm3, %v672_v31  ;;  %v3039_v31 = vld [vmem:[%s3572_s26 + $0x44] ss:$0 sps:$4 sm:$0x77]  }
 0x112   : > { %2480 = vmatprep.mubr.msk.bf16.mxu1 %vm3299_vm0, %v3298_v0 }
 0x113   : > { %2609 = vmatmul.mubr.msk.bf16.gmra.mrb[16].mxu0 %vm425_vm3, %v3812_v32  ;;  %v1615_v32 = vrot.slane %v3827_v28, 2 }
 0x114   : > { %2612 = vmatprep.mubr.msk.bf16.mxu0 %vm3299_vm0, %v3298_v0 }
 0x115   : > { %v1616_v39 = vsel %vm667_vm4, %v1613_v7, %v1615_v32  ;;  %v1618_v37 = vsel %vm667_vm4, %v1615_v32, %v1617_v35 }
 0x119   : > { %2481 = vmatmul.mubr.msk.bf16.gmra.mrb[8].mxu1 %vm425_vm3, %v674_v38 }
 0x11a   : > { %2484 = vmatprep.mubr.msk.bf16.mxu1 %vm3299_vm0, %v3298_v0 }
 0x11b   : > { %2613 = vmatmul.mubr.msk.bf16.gmra.mrb[20].mxu0 %vm425_vm3, %v3827_v28 }
 0x11c   : > { %2616 = vmatprep.mubr.msk.bf16.mxu0 %vm3299_vm0, %v3298_v0 }
 0x121   : > { %2485 = vmatmul.mubr.msk.bf16.gmra.mrb[12].mxu1 %vm425_vm3, %v676_v46 }
 0x122   : > { %2488 = vmatprep.mubr.msk.bf16.mxu1 %vm3299_vm0, %v3298_v0 }
 0x123   : > { %2617 = vmatmul.mubr.msk.bf16.gmra.mrb[24].mxu0 %vm425_vm3, %v3033_v34 }
 0x124   : > { %2622 = vmatprep.mubr.msk.bf16.mxu0 %vm3299_vm0, %v3298_v0 }
 0x129   : > { %2489 = vmatmul.mubr.msk.bf16.gmra.mrb[16].mxu1 %vm425_vm3, %v678_v56  ;;  %v1826_v53 = vpop.permute.xlu0 %1825 }
 0x12a   : > { %2492 = vmatprep.mubr.msk.bf16.mxu1 %vm3299_vm0, %v3298_v0 }
 0x12b   : > { %2623 = vmatmul.mubr.msk.bf16.vlgmr.msra.gmra.mrb[0].mxu0 %vm425_vm3, %v1460_v60 }
 0x12c   : > { %2651 = vmatpush3.bf16.msra.mxu0 %v1641_v61  ;;  %2626 = vmatprep.mubr.msk.bf16.mxu0 %vm3299_vm0, %v3298_v0  ;;  %v1836_v61 = vpop.permute.xlu1 %1835 }
 0x131   : > { %2493 = vmatmul.mubr.msk.bf16.gmra.mrb[20].mxu1 %vm425_vm3, %v680_v4  ;;  %v1831_v58 = vpop.permute.xlu0 %1830 }
 0x132   : > { %2496 = vmatprep.mubr.msk.bf16.mxu1 %vm3299_vm0, %v3298_v0 }
 0x133   : > { %2627 = vmatmul.mubr.msk.bf16.gmra.mrb[4].mxu0 %vm425_vm3, %v1462_v6 }
 0x134   : > { %2630 = vmatprep.mubr.msk.bf16.mxu0 %vm3299_vm0, %v3298_v0 }
 0x139   : > { %2497 = vmatmul.mubr.msk.bf16.gmra.mrb[24].mxu1 %vm425_vm3, %v679_v62 }
 0x13a   : > { %2502 = vmatprep.mubr.msk.bf16.mxu1 %vm3299_vm0, %v3298_v0 }
 0x13b   : > { %2631 = vmatmul.mubr.msk.bf16.gmra.mrb[8].mxu0 %vm425_vm3, %v1464_v10 }
 0x13c   : > { %2634 = vmatprep.mubr.msk.bf16.mxu0 %vm3299_vm0, %v3298_v0 }
 0x141   : > { %2503 = vmatmul.mubr.msk.bf16.vlgmr.msra.gmra.mrb[0].mxu1 %vm425_vm3, %v2208_v15 }
 0x142   : > { %2506 = vmatprep.mubr.msk.bf16.mxu1 %vm3299_vm0, %v3298_v0  ;;  %2681 = vmatpush3.bf16.msra.mxu1 %v3596_v3  ;;  %v1469_v3 = vrot.slane %v3036_v21, 1 }
 0x143   : > { %2635 = vmatmul.mubr.msk.bf16.gmra.mrb[12].mxu0 %vm425_vm3, %v1466_v17  ;;  %v1841_v17 = vpop.permute.xlu1 %1840 }
 0x144   : > { %2638 = vmatprep.mubr.msk.bf16.mxu0 %vm3299_vm0, %v3298_v0  ;;  %v1470_v22 = vsel %vm411_vm2, %v1467_v9, %v1469_v3 }
 0x149   : > { %2507 = vmatmul.mubr.msk.bf16.gmra.mrb[4].mxu1 %vm425_vm3, %v3615_v11  ;;  %v1596_v11 = vld [vmem:[%s3572_s26 + $0x28] sm:$0xc] }
 0x14a   : > { %2510 = vmatprep.mubr.msk.bf16.mxu1 %vm3299_vm0, %v3298_v0  ;;  %v2263_v24 = vcombine.low %v1596_v11, %v3759_v13 }
 0x14b   : > { %2639 = vmatmul.mubr.msk.bf16.gmra.mrb[16].mxu0 %vm425_vm3, %v1468_v19 }
 0x14c   : > { %2642 = vmatprep.mubr.msk.bf16.mxu0 %vm3299_vm0, %v3298_v0  ;;  %v1606_v25 = vrot.slane %v2263_v24, 2 }
 0x151   : > { %2511 = vmatmul.mubr.msk.bf16.gmra.mrb[8].mxu1 %vm425_vm3, %v3625_v20  ;;  %v1607_v20 = vrot.slane %v3772_v18, 2  ;;  %v3038_v18 = vld [vmem:[%s3572_s26 + $0x44] ss:$0 sps:$4 sm:$0x33]   ;;  %s3135_s26 = scalar_lea.vmem %s3134_s16, 1664 }
 0x152   : > { %2514 = vmatprep.mubr.msk.bf16.mxu1 %vm3299_vm0, %v3298_v0  ;;  %p3137_p5 = scmp.lt.s32.totalorder %s3135_s26, %s3129_s18 }
 0x153   : > { %2643 = vmatmul.mubr.msk.bf16.gmra.mrb[20].mxu0 %vm425_vm3, %v1470_v22  ;;  %v1608_v26 = vsel %vm667_vm4, %v1606_v25, %v1607_v20 }
 0x154   : > { %2646 = vmatprep.mubr.msk.bf16.mxu0 %vm3299_vm0, %v3298_v0  ;;  %p3138_p10 = por %p3137_p5, %p3136_p9 }
 0x156   : > { %p3139_p3 = pnand %p3138_p10, %p3132_p7 }
 0x159   : > { %2515 = vmatmul.mubr.msk.bf16.gmra.mrb[12].mxu1 %vm425_vm3, %v3647_v30  ;;  %v1609_v30 = vrot.slane %v3786_v23, 2 }
 0x15a   : > { %2518 = vmatprep.mubr.msk.bf16.mxu1 %vm3299_vm0, %v3298_v0 }
 0x15b   : > { %2647 = vmatmul.mubr.msk.bf16.gmra.mrb[24].mxu0 %vm425_vm3, %v1469_v3  ;;  %v1610_v13 = vsel %vm667_vm4, %v1607_v20, %v1609_v30  ;;  %v1612_v23 = vsel %vm667_vm4, %v1609_v30, %v1611_v5 }
 0x15c   : > { %2652 = vmatprep.mubr.msk.bf16.mxu0 %vm3299_vm0, %v3298_v0 }
 0x161   : > { %2519 = vmatmul.mubr.msk.bf16.gmra.mrb[16].mxu1 %vm425_vm3, %v3663_v36 }
 0x162   : > { %2522 = vmatprep.mubr.msk.bf16.mxu1 %vm3299_vm0, %v3298_v0 }
 0x163   : > { %2653 = vmatmul.mubr.msk.bf16.vlgmr.msra.gmra.mrb[0].mxu0 %vm425_vm3, %v1608_v26 }
 0x164   : > { %2656 = vmatprep.mubr.msk.bf16.mxu0 %vm3299_vm0, %v3298_v0 }
 0x169   : > { %2523 = vmatmul.mubr.msk.bf16.gmra.mrb[20].mxu1 %vm425_vm3, %v3724_v1  ;;  %v1000_v1 = vrot.slane %v3039_v31, 1 }
 0x16a   : > { %2526 = vmatprep.mubr.msk.bf16.mxu1 %vm3299_vm0, %v3298_v0 }
 0x16b   : > { %2657 = vmatmul.mubr.msk.bf16.gmra.mrb[4].mxu0 %vm425_vm3, %v1610_v13  ;;  %v1001_v36 = vsel %vm411_vm2, %v998_v27, %v1000_v1 }
 0x16c   : > { %2660 = vmatprep.mubr.msk.bf16.mxu0 %vm3299_vm0, %v3298_v0 }
 0x171   : > { %2527 = vmatmul.mubr.msk.bf16.gmra.mrb[24].mxu1 %vm425_vm3, %v3038_v18 }
 0x172   : > { %2548 = vmatprep.mubr.msk.bf16.mxu1 %vm3299_vm0, %v3298_v0 }
 0x173   : > { %2661 = vmatmul.mubr.msk.bf16.gmra.mrb[8].mxu0 %vm425_vm3, %v1612_v23  ;;  %v1846_v23 = vpop.permute.xlu0 %1845 }
 0x174   : > { %2664 = vmatprep.mubr.msk.bf16.mxu0 %vm3299_vm0, %v3298_v0 }
 0x179   : > { %2549 = vmatmul.mubr.msk.bf16.vlgmr.msra.gmra.mrb[16].mxu1 %vm425_vm3, %v999_v29 }
 0x17a   : > { %2552 = vmatprep.mubr.msk.bf16.mxu1 %vm3299_vm0, %v3298_v0 }
 0x17b   : > { %2665 = vmatmul.mubr.msk.bf16.gmra.mrb[12].mxu0 %vm425_vm3, %v1614_v14  ;;  %v1851_v14 = vpop.permute.xlu1 %1850 }
 0x17c   : > { %2668 = vmatprep.mubr.msk.bf16.mxu0 %vm3299_vm0, %v3298_v0 }
 0x181   : > { %2553 = vmatmul.mubr.msk.bf16.gmra.mrb[20].mxu1 %vm425_vm3, %v1001_v36 }
 0x182   : > { %2556 = vmatprep.mubr.msk.bf16.mxu1 %vm3299_vm0, %v3298_v0 }
 0x183   : > { %2669 = vmatmul.mubr.msk.bf16.gmra.mrb[16].mxu0 %vm425_vm3, %v1616_v39 }
 0x184   : > { %2672 = vmatprep.mubr.msk.bf16.mxu0 %vm3299_vm0, %v3298_v0 }
 0x189   : > { %2557 = vmatmul.mubr.msk.bf16.gmra.mrb[24].mxu1 %vm425_vm3, %v1000_v1 }
 0x18b   : > { %2673 = vmatmul.mubr.msk.bf16.gmra.mrb[20].mxu0 %vm425_vm3, %v1618_v37 }
 0x18c   : > { %2676 = vmatprep.mubr.msk.bf16.mxu0 %vm3299_vm0, %v3298_v0 }
 0x193   : > { %2677 = vmatmul.mubr.msk.bf16.gmra.mrb[24].mxu0 %vm425_vm3, %v1617_v35 }
 0x214   : > { %v912_v38 = vpop.f32.mrb[0].mxu1 }
 0x215   : > { %v2504_v40 = vpop.f32.mrb[1].mxu1 }
 0x216   : > { %v915_v28 = vpop.f32.mrb[2].mxu1 }
 0x217   : > { %v2505_v42 = vpop.f32.mrb[3].mxu1 }
 0x21c   : > { %v920_v43 = vpop.f32.mrb[4].mxu1 }
 0x21d   : > { %v2508_v44 = vpop.f32.mrb[5].mxu1 }
 0x21e   : > { %v923_v45 = vpop.f32.mrb[6].mxu1 }
 0x21f   : > { %v2509_v46 = vpop.f32.mrb[7].mxu1 }
 0x224   : > { %v928_v47 = vpop.f32.mrb[8].mxu1 }
 0x225   : > { %v2512_v48 = vpop.f32.mrb[9].mxu1 }
 0x226   : > { %v931_v34 = vpop.f32.mrb[10].mxu1 }
 0x227   : > { %v2513_v49 = vpop.f32.mrb[11].mxu1 }
 0x22c   : > { %v3980_v50 = vpop.f32.mrb[12].mxu1 }
 0x22d   : > { %v2516_v51 = vpop.f32.mrb[13].mxu1 }
 0x22e   : > { %v3982_v52 = vpop.f32.mrb[14].mxu1 }
 0x22f   : > { %v2517_v0 = vpop.f32.mrb[15].mxu1 }
 0x230   : > { %v1861_v0 = vpop.permute.xlu1 %1860 }
 0x236   : > { %v1677_v54 = vpop.f32.mrb[0].mxu0 }
 0x237   : > { %v2682_v55 = vadd.f32 %v1677_v54, %v912_v38  ;;  %v2654_v56 = vpop.f32.mrb[1].mxu0 }
 0x238   : > { %v1680_v57 = vpop.f32.mrb[2].mxu0 }
 0x239   : > { %v2683_v59 = vadd.f32 %v1680_v57, %v915_v28  ;;  %v2655_v41 = vpop.f32.mrb[3].mxu0  ;;  %v1888_v60 = vmul.f32 %v2682_v55, %v1826_v53 }
 0x23b   : > { %v2306_v62 = vpack.c.bf16 %v2683_v59, %v2682_v55  ;;  %v1889_v63 = vmul.f32 %v2683_v59, %v1831_v58  ;;  %v1922_v4 = vmul.f32 %v2682_v55, %v1888_v60 }
 0x23d   : > { %2307 = vst [vmem:[%s3985_s7] sm:$0xff] %v2306_v62   ;;  %v1901_v2 = vadd.f32 %v1889_v63, %v1888_v60  ;;  %v1923_v6 = vmul.f32 %v2683_v59, %v1889_v63 }
 0x23e   : > { %v1685_v8 = vpop.f32.mrb[4].mxu0 }
 0x23f   : > { %v1935_v10 = vadd.f32 %v1923_v6, %v1922_v4  ;;  %v2684_v12 = vadd.f32 %v1685_v8, %v920_v43  ;;  %v2658_v15 = vpop.f32.mrb[5].mxu0 }
 0x240   : > { %v1688_v16 = vpop.f32.mrb[6].mxu0  ;;  %v1871_v15 = vpop.permute.xlu1 %1870 }
 0x241   : > { %v1890_v9 = vmul.f32 %v2684_v12, %v1836_v61  ;;  %v2685_v19 = vadd.f32 %v1688_v16, %v923_v45  ;;  %v2659_v21 = vpop.f32.mrb[7].mxu0 }
 0x243   : > { %v1924_v3 = vmul.f32 %v2684_v12, %v1890_v9  ;;  %v2311_v22 = vpack.c.bf16 %v2685_v19, %v2684_v12  ;;  %v1891_v11 = vmul.f32 %v2685_v19, %v1841_v17  ;;  %v1902_v24 = vadd.f32 %v1901_v2, %v1890_v9 }
 0x245   : > { %2333 = vst [vmem:[%s3985_s7 + $0x8] sm:$0xff] %v2311_v22   ;;  %v1903_v20 = vadd.f32 %v1902_v24, %v1891_v11  ;;  %v1925_v25 = vmul.f32 %v2685_v19, %v1891_v11  ;;  %v1936_v26 = vadd.f32 %v1935_v10, %v1924_v3 }
 0x246   : > { %v1693_v30 = vpop.f32.mrb[8].mxu0 }
 0x247   : > { %v1937_v13 = vadd.f32 %v1936_v26, %v1925_v25  ;;  %v2686_v18 = vadd.f32 %v1693_v30, %v928_v47  ;;  %v2662_v5 = vpop.f32.mrb[9].mxu0  ;;  %v1856_v47 = vpop.permute.xlu0 %1855 }
 0x248   : > { %v1696_v27 = vpop.f32.mrb[10].mxu0 }
 0x249   : > { %v1892_v7 = vmul.f32 %v2686_v18, %v1846_v23  ;;  %v2687_v29 = vadd.f32 %v1696_v27, %v931_v34  ;;  %v2663_v31 = vpop.f32.mrb[11].mxu0 }
 0x24a   : > { %v1881_v31 = vpop.permute.xlu1 %1880 }
 0x24b   : > { %v1904_v1 = vadd.f32 %v1903_v20, %v1892_v7  ;;  %v1926_v32 = vmul.f32 %v2686_v18, %v1892_v7  ;;  %v2316_v36 = vpack.c.bf16 %v2687_v29, %v2686_v18  ;;  %v1893_v39 = vmul.f32 %v2687_v29, %v1851_v14 }
 0x24c   : > { %v1092_v33 = vpop.f32.mrb[16].mxu1 }
 0x24d   : > { %v2550_v35 = vpop.f32.mrb[17].mxu1  ;;  %v1938_v37 = vadd.f32 %v1937_v13, %v1926_v32  ;;  %2334 = vst [vmem:[%s3985_s7 + $0x10] sm:$0xff] %v2316_v36   ;;  %v1905_v38 = vadd.f32 %v1904_v1, %v1893_v39  ;;  %v1927_v40 = vmul.f32 %v2687_v29, %v1893_v39 }
 0x24e   : > { %v1095_v28 = vpop.f32.mrb[18].mxu1  ;;  %v1701_v42 = vpop.f32.mrb[12].mxu0 }
 0x24f   : > { %v2551_v43 = vpop.f32.mrb[19].mxu1  ;;  %v1939_v44 = vadd.f32 %v1938_v37, %v1927_v40  ;;  %v2688_v45 = vadd.f32 %v1701_v42, %v3980_v50  ;;  %v2666_v46 = vpop.f32.mrb[13].mxu0 }
 0x250   : > { %v1704_v48 = vpop.f32.mrb[14].mxu0 }
 0x251   : > { %v1894_v34 = vmul.f32 %v2688_v45, %v1856_v47  ;;  %v2689_v49 = vadd.f32 %v1704_v48, %v3982_v52  ;;  %v2667_v51 = vpop.f32.mrb[15].mxu0  ;;  %v1866_v52 = vpop.permute.xlu0 %1865 }
 0x253   : > { %v1906_v53 = vadd.f32 %v1905_v38, %v1894_v34  ;;  %v1928_v54 = vmul.f32 %v2688_v45, %v1894_v34  ;;  %v2321_v55 = vpack.c.bf16 %v2689_v49, %v2688_v45  ;;  %v1895_v56 = vmul.f32 %v2689_v49, %v1861_v0 }
 0x254   : > { %v1100_v57 = vpop.f32.mrb[20].mxu1 }
 0x255   : > { %v2554_v58 = vpop.f32.mrb[21].mxu1  ;;  %v1940_v59 = vadd.f32 %v1939_v44, %v1928_v54  ;;  %2335 = vst [vmem:[%s3985_s7 + $0x18] sm:$0xff] %v2321_v55   ;;  %v1907_v41 = vadd.f32 %v1906_v53, %v1895_v56  ;;  %v1929_v60 = vmul.f32 %v2689_v49, %v1895_v56  ;;  %v1876_v5 = vpop.permute.xlu0 %1875 }
 0x256   : > { %v1103_v61 = vpop.f32.mrb[22].mxu1  ;;  %v1709_v50 = vpop.f32.mrb[16].mxu0 }
 0x257   : > { %v2555_v62 = vpop.f32.mrb[23].mxu1  ;;  %v1941_v63 = vadd.f32 %v1940_v59, %v1929_v60  ;;  %v2690_v2 = vadd.f32 %v1709_v50, %v1092_v33  ;;  %v2670_v4 = vpop.f32.mrb[17].mxu0 }
 0x258   : > { %v1712_v6 = vpop.f32.mrb[18].mxu0 }
 0x259   : > { %v1896_v8 = vmul.f32 %v2690_v2, %v1866_v52  ;;  %v2691_v10 = vadd.f32 %v1712_v6, %v1095_v28  ;;  %v2671_v12 = vpop.f32.mrb[19].mxu0  ;;  %v1886_v42 = vpop.permute.xlu0 %1885 }
 0x25b   : > { %v1908_v16 = vadd.f32 %v1907_v41, %v1896_v8  ;;  %v1930_v17 = vmul.f32 %v2690_v2, %v1896_v8  ;;  %v2326_v9 = vpack.c.bf16 %v2691_v10, %v2690_v2  ;;  %v1897_v19 = vmul.f32 %v2691_v10, %v1871_v15 }
 0x25c   : > { %v1108_v21 = vpop.f32.mrb[24].mxu1 }
 0x25d   : > { %v2558_v3 = vpop.f32.mrb[25].mxu1  ;;  %v1942_v22 = vadd.f32 %v1941_v63, %v1930_v17  ;;  %2336 = vst [vmem:[%s3985_s7 + $0x20] sm:$0xff] %v2326_v9   ;;  %v1909_v11 = vadd.f32 %v1908_v16, %v1897_v19  ;;  %v1931_v24 = vmul.f32 %v2691_v10, %v1897_v19 }
 0x25e   : > { %v1111_v20 = vpop.f32.mrb[26].mxu1  ;;  %v1717_v25 = vpop.f32.mrb[20].mxu0 }
 0x25f   : > { %v2559_v26 = vpop.f32.mrb[27].mxu1  ;;  %v1943_v30 = vadd.f32 %v1942_v22, %v1931_v24  ;;  %v2692_v13 = vadd.f32 %v1717_v25, %v1100_v57  ;;  %v2674_v18 = vpop.f32.mrb[21].mxu0 }
 0x260   : > { %v1720_v23 = vpop.f32.mrb[22].mxu0 }
 0x261   : > { %v1898_v27 = vmul.f32 %v2692_v13, %v1876_v5  ;;  %v2693_v7 = vadd.f32 %v1720_v23, %v1103_v61  ;;  %v2675_v29 = vpop.f32.mrb[23].mxu0 }
 0x263   : > { %v1910_v14 = vadd.f32 %v1909_v11, %v1898_v27  ;;  %v1932_v1 = vmul.f32 %v2692_v13, %v1898_v27  ;;  %v2331_v32 = vpack.c.bf16 %v2693_v7, %v2692_v13  ;;  %v1899_v36 = vmul.f32 %v2693_v7, %v1881_v31 }
 0x265   : > { %v1944_v39 = vadd.f32 %v1943_v30, %v1932_v1  ;;  %2337 = vst [vmem:[%s3985_s7 + $0x28] sm:$0xff] %v2331_v32   ;;  %v1911_v33 = vadd.f32 %v1910_v14, %v1899_v36  ;;  %v1933_v35 = vmul.f32 %v2693_v7, %v1899_v36 }
 0x266   : > { %v1725_v37 = vpop.f32.mrb[24].mxu0 }
 0x267   : > { %v1945_v38 = vadd.f32 %v1944_v39, %v1933_v35  ;;  %v2694_v40 = vadd.f32 %v1725_v37, %v1108_v21  ;;  %v2678_v28 = vpop.f32.mrb[25].mxu0 }
 0x268   : > { %v1728_v43 = vpop.f32.mrb[26].mxu0 }
 0x269   : > { %v2302_v44 = vpack.c.bf16 %v2694_v40, %v2694_v40  ;;  %v1900_v45 = vmul.f32 %v2694_v40, %v1886_v42  ;;  %v2679_v46 = vpop.f32.mrb[27].mxu0 }
 0x26b   : > { %1809 = vst [vmem:[%s3985_s7 + $0x30] sm:$0x3] %v2302_v44  ;;  %v1913_v47 = vsel %vm1912_vm5, %v1900_v45, 0.0  ;;  %v1934_v48 = vmul.f32 %v2694_v40, %v1900_v45 }
 0x26c   : > { %v1914_v34 = vadd.f32 %v1913_v47, %v1911_v33 }
 0x26d   : > { %3142 = shalt.err (!%p3139_p3)
}
 0x26e   : > { %s3143_s14 = scalar_lea.hbm %s4002_s10, 832  ;;  %s3147_s17 = scalar_lea.hbm %s4131_s3, 6656 }
 0x26f   : > { %p3144_p13 = scmp.ne.s32.totalorder %s4002_s10, %s3143_s14  ;;  %p3148_p2 = scmp.lt.u32.totalorder %s4002_s10, %s4131_s3 }
 0x270   : > { %p3149_p1 = scmp.lt.u32.totalorder %s3147_s17, %s3143_s14  ;;  %p3151_p6 = scmp.lt.u32.totalorder %s3143_s14, %s4002_s10 }
 0x271   : > { %p3145_p8 = pnand %p3144_p13, %p4166_p11 }
 0x272   : > { %p3150_p4 = por %p3149_p1, %p3148_p2 }
 0x273   : > { %p3146_p0 = pneg %p3145_p8 }
 0x274   : > { %p3152_p12 = por %p3151_p6, %p3150_p4 }
 0x276   : > { %p3153_p7 = pnand %p3152_p12, %p3146_p0 }
 0x278   : > { %3156 = shalt.err (!%p3153_p7)
}
 0x279   : > { %s3302_s0 = smov 64   ;;  %s3303_s23 = smov 4   ;;  %v1946_v49 = vsel %vm1912_vm5, %v1934_v48, 0.0  ;;  %v1915_v51 = vrot.slane %v1914_v34, 4 }
 0x27a   : > { %2907 = dma.vmem_to_hbm [thread:$0]  (%p4166_p11), %s3997_s9, 832, %s4002_s10, %s1956_s27, %s3302_s0, %s3302_s0, %s3303_s23   ;;  %v1947_v0 = vadd.f32 %v1946_v49, %v1945_v38 }
 0x27b   : > { %v1916_v53 = vadd.f32 %v1915_v51, %v1914_v34  ;;  %s2286_s18 = sshll.u32 %s3434_s15, 4  ;;  %s340_s29 = scalar_lea.vmem [#allocation9], %s3567_s28 }
 0x27c   : > { %v1948_v54 = vrot.slane %v1947_v0, 4  ;;  %s1993_s16 = sshll.u32 %s340_s29, 4  ;;  %s346_s26 = scalar_lea.vmem [#allocation11], %s3567_s28  ;;  %s4041_s16 = int_to_ptr.vmem [resolvable:$true] %s1993_s16 }
 0x27d   : > { %v1917_v55 = vrot.slane %v1916_v53, 2  ;;  %s2006_s9 = sshll.u32 %s346_s26, 4  ;;  %s4039_s14 = scalar_lea.hbm %s4132_s4, %s2286_s18  ;;  %s4048_s9 = int_to_ptr.vmem [resolvable:$true] %s2006_s9 }
 0x27e   : > { %v1949_v56 = vadd.f32 %v1948_v54, %v1947_v0  ;;  %s4046_s17 = scalar_lea.hbm %s4133_s5, %s2286_s18  ;;  %s4052_s7 = scalar_lea.sflag [#allocation10], %s290_s8 }
 0x27f   : > { %v1918_v57 = vadd.f32 %v1917_v55, %v1916_v53  ;;  %s3157_s12 = scalar_lea.vmem %s4041_s16, 16  ;;  %s3304_s0 = smov [#allocation9]  }
 0x280   : > { %v1950_v58 = vrot.slane %v1949_v56, 2  ;;  %p3158_p9 = scmp.ne.s32.totalorder %s4041_s16, %s3157_s12  ;;  %s3161_s23 = sshll.u32 %s3304_s0, 4  ;;  %s3162_s23 = int_to_ptr.vmem [resolvable:$false] %s3161_s23 }
 0x281   : > { %v1919_v41 = vrot.slane %v1918_v57, 1  ;;  %p3164_p3 = scmp.lt.s32.totalorder %s4041_s16, %s3162_s23 }
 0x282   : > { %v1951_v59 = vadd.f32 %v1950_v58, %v1949_v56  ;;  %p3159_p5 = pnand %p3158_p9, %p4166_p11 }
 0x283   : > { %v1920_v61 = vadd.f32 %v1919_v41, %v1918_v57 }
 0x284   : > { %v1952_v60 = vrot.slane %v1951_v59, 1  ;;  %p3160_p10 = pneg %p3159_p5 }
 0x285   : > { %1921 = vst [vmem:[%s340_s29] sm:$0x1] %v1920_v61  ;;  %s3163_s29 = scalar_lea.vmem %s3162_s23, 32 }
 0x286   : > { %v1953_v50 = vadd.f32 %v1952_v60, %v1951_v59  ;;  %p3165_p13 = scmp.lt.s32.totalorder %s3163_s29, %s3157_s12 }
 0x288   : > { %p3166_p8 = por %p3165_p13, %p3164_p3 }
 0x28a   : > { %p3167_p0 = pnand %p3166_p8, %p3160_p10 }
 0x28c   : > { %3170 = shalt.err (!%p3167_p0)
}
 0x28d   : > { %s3171_s15 = scalar_lea.hbm %s4039_s14, 16  ;;  %s3175_s10 = scalar_lea.hbm %s4132_s4, 128 }
 0x28e   : > { %p3172_p2 = scmp.ne.s32.totalorder %s4039_s14, %s3171_s15  ;;  %p3176_p6 = scmp.lt.u32.totalorder %s4039_s14, %s4132_s4 }
 0x28f   : > { %p3177_p12 = scmp.lt.u32.totalorder %s3175_s10, %s3171_s15  ;;  %p3179_p9 = scmp.lt.u32.totalorder %s3171_s15, %s4039_s14 }
 0x290   : > { %p3173_p1 = pnand %p3172_p2, %p4166_p11 }
 0x291   : > { %p3178_p7 = por %p3177_p12, %p3176_p6 }
 0x292   : > { %p3174_p4 = pneg %p3173_p1 }
 0x293   : > { %p3180_p5 = por %p3179_p9, %p3178_p7 }
 0x295   : > { %p3181_p10 = pnand %p3180_p5, %p3174_p4 }
 0x297   : > { %3184 = shalt.err (!%p3181_p10)
}
 0x298   : > { %2908 = dma.vmem_to_hbm [thread:$0]  (%p4166_p11), %s4041_s16, 16, %s4039_s14, %s4052_s7   ;;  %1954 = vst [vmem:[%s346_s26] sm:$0x1] %v1953_v50 }
 0x299   : > { %s3185_s6 = scalar_lea.vmem %s4048_s9, 16  ;;  %s3305_s12 = smov [#allocation11]  }
 0x29a   : > { %p3186_p3 = scmp.ne.s32.totalorder %s4048_s9, %s3185_s6  ;;  %s3189_s0 = sshll.u32 %s3305_s12, 4  ;;  %s3190_s0 = int_to_ptr.vmem [resolvable:$false] %s3189_s0 }
 0x29b   : > { %s3191_s23 = scalar_lea.vmem %s3190_s0, 32  ;;  %p3192_p0 = scmp.lt.s32.totalorder %s4048_s9, %s3190_s0 }
 0x29c   : > { %p3187_p13 = pnand %p3186_p3, %p4166_p11  ;;  %p3193_p2 = scmp.lt.s32.totalorder %s3191_s23, %s3185_s6 }
 0x29e   : > { %p3188_p8 = pneg %p3187_p13  ;;  %p3194_p1 = por %p3193_p2, %p3192_p0 }
 0x2a0   : > { %p3195_p4 = pnand %p3194_p1, %p3188_p8 }
 0x2a2   : > { %3198 = shalt.err (!%p3195_p4)
}
 0x2a3   : > { %s3199_s28 = scalar_lea.hbm %s4046_s17, 16  ;;  %s3203_s14 = scalar_lea.hbm %s4133_s5, 128 }
 0x2a4   : > { %p3200_p6 = scmp.ne.s32.totalorder %s4046_s17, %s3199_s28  ;;  %p3204_p9 = scmp.lt.u32.totalorder %s4046_s17, %s4133_s5 }
 0x2a5   : > { %p3205_p5 = scmp.lt.u32.totalorder %s3203_s14, %s3199_s28  ;;  %p3207_p3 = scmp.lt.u32.totalorder %s3199_s28, %s4046_s17 }
 0x2a6   : > { %p3201_p12 = pnand %p3200_p6, %p4166_p11 }
 0x2a7   : > { %p3206_p10 = por %p3205_p5, %p3204_p9 }
 0x2a8   : > { %p3202_p7 = pneg %p3201_p12 }
 0x2a9   : > { %p3208_p13 = por %p3207_p3, %p3206_p10 }
 0x2ab   : > { %p3209_p8 = pnand %p3208_p13, %p3202_p7 }
 0x2ad   : > { %3212 = shalt.err (!%p3209_p8)
}
 0x2ae   : > { %2909 = dma.vmem_to_hbm [thread:$0]  (%p4166_p11), %s4048_s9, 16, %s4046_s17, %s4052_s7  }
 0x2af PF: > { %s4167_s8 = sld [smem:[#allocation19_spill]]  ;;  %p2937_p0 = scmp.ge.s32.totalorder %s3287_s24, 2 }
 0x2b0   : > { %s2018_s18 = sand.u32 1, %s3275_s21  }
 0x2b1   : > { %s2019_s10 = scalar_lea.sflag [#allocation4], %s2018_s18 }
 0x2b5   : > { %p4168_p2 = scmp.ne.s32.totalorder %s4167_s8, 0 }
 0x2b7   : > { %p2925_p1 = pnand %p2937_p0, %p4168_p2 }
 0x2b9   : > { %3254 = dma.done.wait (!%p2925_p1), %s2019_s10, 832  }
 0x2ba   : > { %3256 = vsyncadd (!%p2925_p1), %s2019_s10, 4294966464  ;;  %s4169_s27 = sadd.s32 4294967294, %s3287_s24  }
 0x2bb   : > { %s2027_s13 = sand.u32 1, %s4169_s27  }
 0x2bc   : > { %s2028_s6 = scalar_lea.sflag [#allocation10], %s2027_s13 }
 0x2bd   : > { %3258 = dma.done.wait (!%p2925_p1), %s2028_s6, 32  }
 0x2be   : > { %3260 = vsyncadd (!%p2925_p1), %s2028_s6, 4294967264  ;;  %s4170_s11 = sld [smem:[#allocation17_spill]]  ;;  %s4171_s23 = sld [smem:[#allocation18_spill]] }
 0x2bf   : > { %p23_p11 = scmp.ge.s32.totalorder %s3372_s25, 10   ;;  %s4172_s18 = smov %s3267_s19 }
 0x2c0   : > { %s4173_s19 = smov %s3271_s20  ;;  %s4174_s20 = smov %s3535_s30 }
 0x2c1   : > { %s4175_s21 = smov %s3279_s22  ;;  %s4177_s24 = smov %s3372_s25 }
 0x2c2   :  { %25 = sbr.rel (!%p23_p11) target bundleno = 12 (0xc), region = 132 }
 0x2c4   : > { %s4176_s22 = smov %s4170_s11 }
 0x2c9   :  { %2040 = vsyncpa [#allocation3], 1 }
 0x2ca   :  { %2042 = vsyncpa [#allocation3 + $0x1], 1 }
 0x2cb   :  { %2043 = vsyncpa [#allocation6], 1 }
 0x2cc   :  { %2044 = vsyncpa [#allocation4], 1 }
 0x2cd   :  { %2046 = vsyncpa [#allocation4 + $0x1], 1 }
 0x2ce   :  { %2047 = vsyncpa [#allocation10], 1 }
 0x2cf   :  { %2049 = vsyncpa [#allocation10 + $0x1], 1 }

</bundles_post_ra>
